<compile_context>
chip_gen: v6e
topology: v6e:2x2x1
jax: 0.10.0
libtpu: 0.0.40
codegen_flags: <defaults>
</compile_context>

<pallas_src>
import functools

import jax
import jax.numpy as jnp
from jax.experimental import pallas as pl
from jax.experimental.pallas import tpu as pltpu

OUT = 2          # edge-logit width of the module (Linear(hidden_dim, 2))
OUT_PAD = 128    # lane-dense padded output width stored by the kernel


# ----------------------------- Pallas kernel ---------------------------------
def edge_mlp_kernel(src_ref, dst_ref, ab_ref, b1_ref, w2_ref, b2_ref, out_ref):
    """One grid step handles tile_e edges.

    src_ref/dst_ref : (tile_e, 1) int32 node ids
    ab_ref          : (2N, H)  = [node_emb @ W1[:D] ; node_emb @ W1[D:]]
    b1_ref          : (1, H)
    w2_ref          : (H, 128) (zero-padded beyond column 2)
    b2_ref          : (1, 128) (zero-padded beyond column 2)
    out_ref         : (tile_e, 128) f32
    """
    te = src_ref.shape[0]
    two_n = ab_ref.shape[0]
    n = two_n // 2

    src = src_ref[...]                                   # (te, 1) int32
    dst = dst_ref[...]                                   # (te, 1) int32

    # Single merged one-hot over 2N columns: src hits columns [0, N),
    # dst + N hits columns [N, 2N).  One MXU matmul with K = 2N replaces the
    # previous gather + concat + Linear(2D->H).
    # NOTE: out-of-range node ids (which PyTorch indexing would reject) are
    # not checked here; well-formed graphs always have ids in [0, N).
    iota = jax.lax.broadcasted_iota(jnp.int32, (te, two_n), 1)
    onehot = jnp.logical_or(iota == src, iota == dst + n).astype(jnp.float32)

    h = jnp.dot(onehot, ab_ref[...], preferred_element_type=jnp.float32)
    h = h + b1_ref[...]
    h = jnp.where(h > 0, h, 0.01 * h)                    # LeakyReLU(0.01)

    logits = jnp.dot(h, w2_ref[...], preferred_element_type=jnp.float32)
    logits = logits + b2_ref[...]                        # (te, 128) lane-dense

    out_ref[...] = logits.astype(out_ref.dtype)


# ------------------------------- wrapper --------------------------------------
@functools.partial(jax.jit, static_argnames=("tile_e",))
def edge_mask_generator_forward(src, dst, node_emb, w1, b1, w2, b2, *,
                                tile_e=512):
    """edge_logits = mlp_edge_model(cat([node_emb[src], node_emb[dst]], 1))."""
    E = src.shape[0]
    N, D = node_emb.shape
    H = w1.shape[1]

    # --- Fold W1 into the gather (done once, outside the per-edge hot loop). --
    a = jnp.dot(node_emb, w1[:D, :], preferred_element_type=jnp.float32)   # (N,H)
    b = jnp.dot(node_emb, w1[D:, :], preferred_element_type=jnp.float32)   # (N,H)
    ab = jnp.concatenate([a, b], axis=0)                                   # (2N,H)

    # --- Ragged tail: pad E up to a multiple of tile_e, slice back after. ----
    e_pad = pl.cdiv(E, tile_e) * tile_e
    pad = e_pad - E
    src2 = jnp.pad(src.astype(jnp.int32), (0, pad)).reshape(e_pad, 1)
    dst2 = jnp.pad(dst.astype(jnp.int32), (0, pad)).reshape(e_pad, 1)

    b1_2 = b1.reshape(1, H).astype(jnp.float32)
    # Lane-dense output: pad the second Linear to 128 output lanes.
    w2_pad = jnp.zeros((H, OUT_PAD), jnp.float32).at[:, :OUT].set(w2)
    b2_pad = jnp.zeros((1, OUT_PAD), jnp.float32).at[:, :OUT].set(
        b2.reshape(1, OUT))

    grid = (e_pad // tile_e,)

    cost = pl.CostEstimate(
        flops=2 * e_pad * (2 * N * H + H * OUT_PAD),
        transcendentals=0,
        bytes_accessed=(e_pad * (2 * 4 + OUT_PAD * 4)
                        + 4 * (2 * N * H + H + H * OUT_PAD + OUT_PAD)),
    )

    out_pad = pl.pallas_call(
        edge_mlp_kernel,
        out_shape=jax.ShapeDtypeStruct((e_pad, OUT_PAD), jnp.float32),
        grid_spec=pltpu.PrefetchScalarGridSpec(
            num_scalar_prefetch=0,
            grid=grid,
            in_specs=[
                pl.BlockSpec((tile_e, 1), lambda i: (i, 0)),     # src ids
                pl.BlockSpec((tile_e, 1), lambda i: (i, 0)),     # dst ids
                pl.BlockSpec((2 * N, H), lambda i: (0, 0)),      # AB (resident)
                pl.BlockSpec((1, H), lambda i: (0, 0)),          # b1
                pl.BlockSpec((H, OUT_PAD), lambda i: (0, 0)),    # W2 (padded)
                pl.BlockSpec((1, OUT_PAD), lambda i: (0, 0)),    # b2 (padded)
            ],
            out_specs=pl.BlockSpec((tile_e, OUT_PAD), lambda i: (i, 0)),
        ),
        compiler_params=pltpu.CompilerParams(
            dimension_semantics=("parallel",)),
        cost_estimate=cost,
    )(src2, dst2, ab, b1_2, w2_pad, b2_pad)

    # TODO(synk): for large graphs (N beyond a few thousand) replace the
    # one-hot gather with scalar-prefetched src/dst indices + DMA row gather
    # from node_emb kept in HBM (pl.ANY); the one-hot path is O(tile_e * 2N).
    return out_pad[:E, :OUT]


# ----------------------------- parameter init --------------------------------
def xavier_uniform(key, fan_in, fan_out, dtype=jnp.float32):
    limit = (6.0 / (fan_in + fan_out)) ** 0.5
    # Stored as (in, out) so forward is x @ W.
    return jax.random.uniform(key, (fan_in, fan_out), dtype, -limit, limit)


# ------------------------------------ main ------------------------------------
if __name__ == "__main__":
    key = jax.random.PRNGKey(0)
    k_enc1, k_enc2, k_feat, k_src, k_dst, k_w1, k_w2 = jax.random.split(key, 7)

    # Small, module-consistent sizes.
    N = 64            # number of graph nodes
    F = 16            # raw node feature dim
    layer_dim = 16    # per-encoder-layer output dim
    emb_dim = 2 * layer_dim   # concat of 2 encoder layer outputs -> 32
    hidden_dim = 32
    E = 2000          # number of edges (deliberately NOT a multiple of tile_e)
    TILE_E = 512      # -> 4 grid steps (keeps both v7x TensorCores busy)

    # TODO(synk): `encoder` is an external user-supplied module; synthesized
    # here as a 2-layer plain-JAX stub whose per-layer outputs are concatenated.
    x = jax.random.normal(k_feat, (N, F), jnp.float32)
    we1 = xavier_uniform(k_enc1, F, layer_dim)
    we2 = xavier_uniform(k_enc2, layer_dim, layer_dim)
    h1 = jnp.maximum(x @ we1, 0.0)
    h2 = jnp.maximum(h1 @ we2, 0.0)
    node_emb = jnp.concatenate([h1, h2], axis=-1)        # (N, emb_dim)

    # Edge index (src, dst) — deterministic.
    src = jax.random.randint(k_src, (E,), 0, N, jnp.int32)
    dst = jax.random.randint(k_dst, (E,), 0, N, jnp.int32)

    # mlp_edge_model parameters (Xavier-uniform weights, zero biases).
    w1 = xavier_uniform(k_w1, emb_dim * 2, hidden_dim)
    b1 = jnp.zeros((hidden_dim,), jnp.float32)
    w2 = xavier_uniform(k_w2, hidden_dim, 2)
    b2 = jnp.zeros((2,), jnp.float32)

    # Pallas kernel.
    edge_logits = edge_mask_generator_forward(
        src, dst, node_emb, w1, b1, w2, b2, tile_e=TILE_E)
    edge_logits = jax.block_until_ready(edge_logits)

    # Pure-JAX reference for validation (faithful to the PyTorch module).
    emb_src = node_emb[src]
    emb_dst = node_emb[dst]
    edge_emb = jnp.concatenate([emb_src, emb_dst], axis=1)
    h = edge_emb @ w1 + b1
    h = jnp.where(h > 0, h, 0.01 * h)
    ref = h @ w2 + b2

    assert edge_logits.shape == (E, 2)
    assert jnp.allclose(edge_logits, ref, atol=1e-4, rtol=1e-4)
    print("KERNEL_OK")
</pallas_src>

<mosaic_0001>
module attributes {stable_mosaic.version = 11 : i64} {
  func.func @edge_mlp_kernel(%arg0: i32, %arg1: memref<512x1xi32, #tpu.memory_space<vmem>>, %arg2: memref<512x1xi32, #tpu.memory_space<vmem>>, %arg3: memref<128x32xf32, #tpu.memory_space<vmem>>, %arg4: memref<1x32xf32, #tpu.memory_space<vmem>>, %arg5: memref<32x128xf32, #tpu.memory_space<vmem>>, %arg6: memref<1x128xf32, #tpu.memory_space<vmem>>, %arg7: memref<512x128xf32, #tpu.memory_space<vmem>>) attributes {dimension_semantics = [#tpu.dimension_semantics<parallel>], iteration_bounds = array<i64: 4>, scalar_prefetch = 0 : i64, scratch_operands = 0 : i64, tpu.core_type = #tpu.core_type<tc>, window_params = [{transform_indices = @transform_0, window_bounds = array<i64: 512, 1>}, {transform_indices = @transform_1, window_bounds = array<i64: 512, 1>}, {pipeline_mode = #tpu.pipeline_mode<synchronous>, transform_indices = @transform_2, window_bounds = array<i64: 128, 32>}, {pipeline_mode = #tpu.pipeline_mode<synchronous>, transform_indices = @transform_3, window_bounds = array<i64: 1, 32>}, {pipeline_mode = #tpu.pipeline_mode<synchronous>, transform_indices = @transform_4, window_bounds = array<i64: 32, 128>}, {pipeline_mode = #tpu.pipeline_mode<synchronous>, transform_indices = @transform_5, window_bounds = array<i64: 1, 128>}, {transform_indices = @transform_6, window_bounds = array<i64: 512, 128>}]} {
    %c0 = arith.constant 0 : index
    %c0_0 = arith.constant 0 : index
    %0 = vector.load %arg1[%c0, %c0_0] : memref<512x1xi32, #tpu.memory_space<vmem>>, vector<512x1xi32>
    %c0_1 = arith.constant 0 : index
    %c0_2 = arith.constant 0 : index
    %1 = vector.load %arg2[%c0_1, %c0_2] : memref<512x1xi32, #tpu.memory_space<vmem>>, vector<512x1xi32>
    %2 = tpu.iota {dimensions = array<i32: 1>} : vector<512x128xi32>
    %3 = vector.broadcast %0 : vector<512x1xi32> to vector<512x128xi32>
    %4 = arith.cmpi eq, %2, %3 : vector<512x128xi32>
    %c64_i32 = arith.constant 64 : i32
    %5 = vector.broadcast %c64_i32 : i32 to vector<512x1xi32>
    %6 = arith.addi %1, %5 : vector<512x1xi32>
    %7 = vector.broadcast %6 : vector<512x1xi32> to vector<512x128xi32>
    %8 = arith.cmpi eq, %2, %7 : vector<512x128xi32>
    %9 = arith.ori %4, %8 : vector<512x128xi1>
    %10 = arith.extui %9 : vector<512x128xi1> to vector<512x128xi32>
    %11 = arith.sitofp %10 : vector<512x128xi32> to vector<512x128xf32>
    %c0_3 = arith.constant 0 : index
    %c0_4 = arith.constant 0 : index
    %12 = vector.load %arg3[%c0_3, %c0_4] : memref<128x32xf32, #tpu.memory_space<vmem>>, vector<128x32xf32>
    %cst = arith.constant dense<0.000000e+00> : vector<512x32xf32>
    %13 = tpu.matmul %11, %12, %cst {dimension_numbers = #tpu.dot_dimension_numbers<[1], [0], [0], [1], [0, 0, 1, 1], [], []>} : vector<512x128xf32>, vector<128x32xf32>, vector<512x32xf32> -> vector<512x32xf32>
    %c0_5 = arith.constant 0 : index
    %c0_6 = arith.constant 0 : index
    %14 = vector.load %arg4[%c0_5, %c0_6] : memref<1x32xf32, #tpu.memory_space<vmem>>, vector<1x32xf32>
    %15 = vector.broadcast %14 : vector<1x32xf32> to vector<512x32xf32>
    %16 = arith.addf %13, %15 : vector<512x32xf32>
    %cst_7 = arith.constant 0.000000e+00 : f32
    %17 = vector.broadcast %cst_7 : f32 to vector<512x32xf32>
    %18 = arith.cmpf ogt, %16, %17 : vector<512x32xf32>
    %cst_8 = arith.constant 0.00999999977 : f32
    %19 = vector.broadcast %cst_8 : f32 to vector<512x32xf32>
    %20 = arith.mulf %19, %16 : vector<512x32xf32>
    %21 = arith.select %18, %16, %20 : vector<512x32xi1>, vector<512x32xf32>
    %c0_9 = arith.constant 0 : index
    %c0_10 = arith.constant 0 : index
    %22 = vector.load %arg5[%c0_9, %c0_10] : memref<32x128xf32, #tpu.memory_space<vmem>>, vector<32x128xf32>
    %cst_11 = arith.constant dense<0.000000e+00> : vector<512x128xf32>
    %23 = tpu.matmul %21, %22, %cst_11 {dimension_numbers = #tpu.dot_dimension_numbers<[1], [0], [0], [1], [0, 0, 1, 1], [], []>} : vector<512x32xf32>, vector<32x128xf32>, vector<512x128xf32> -> vector<512x128xf32>
    %c0_12 = arith.constant 0 : index
    %c0_13 = arith.constant 0 : index
    %24 = vector.load %arg6[%c0_12, %c0_13] : memref<1x128xf32, #tpu.memory_space<vmem>>, vector<1x128xf32>
    %25 = vector.broadcast %24 : vector<1x128xf32> to vector<512x128xf32>
    %26 = arith.addf %23, %25 : vector<512x128xf32>
    %c0_14 = arith.constant 0 : index
    %c0_15 = arith.constant 0 : index
    %27 = vector.load %arg7[%c0_14, %c0_15] : memref<512x128xf32, #tpu.memory_space<vmem>>, vector<512x128xf32>
    tpu.vector_store %arg7[%c0_14, %c0_15], %26 {strides = array<i32>} : memref<512x128xf32, #tpu.memory_space<vmem>>, vector<512x128xf32>,
    return
  }
  func.func @transform_0(%arg0: i32) -> (i32, i32) {
    %c0_i32 = arith.constant 0 : i32
    %c0_i32_0 = arith.constant 0 : i32
    return %arg0, %c0_i32 : i32, i32
  }
  func.func @transform_1(%arg0: i32) -> (i32, i32) {
    %c0_i32 = arith.constant 0 : i32
    %c0_i32_0 = arith.constant 0 : i32
    return %arg0, %c0_i32 : i32, i32
  }
  func.func @transform_2(%arg0: i32) -> (i32, i32) {
    %c0_i32 = arith.constant 0 : i32
    %c0_i32_0 = arith.constant 0 : i32
    %c0_i32_1 = arith.constant 0 : i32
    return %c0_i32, %c0_i32_0 : i32, i32
  }
  func.func @transform_3(%arg0: i32) -> (i32, i32) {
    %c0_i32 = arith.constant 0 : i32
    %c0_i32_0 = arith.constant 0 : i32
    %c0_i32_1 = arith.constant 0 : i32
    return %c0_i32, %c0_i32_0 : i32, i32
  }
  func.func @transform_4(%arg0: i32) -> (i32, i32) {
    %c0_i32 = arith.constant 0 : i32
    %c0_i32_0 = arith.constant 0 : i32
    %c0_i32_1 = arith.constant 0 : i32
    return %c0_i32, %c0_i32_0 : i32, i32
  }
  func.func @transform_5(%arg0: i32) -> (i32, i32) {
    %c0_i32 = arith.constant 0 : i32
    %c0_i32_0 = arith.constant 0 : i32
    %c0_i32_1 = arith.constant 0 : i32
    return %c0_i32, %c0_i32_0 : i32, i32
  }
  func.func @transform_6(%arg0: i32) -> (i32, i32) {
    %c0_i32 = arith.constant 0 : i32
    %c0_i32_0 = arith.constant 0 : i32
    return %arg0, %c0_i32 : i32, i32
  }
}

</mosaic_0001>

<bundles_post_ra>
// kernel: edge_mask_generator_forward.1
= control target key start
LH: loop header
LB: loop body
LE: loop exit
PB: predicated region body
PF: predicated region fallthrough
CT: control target
= control target key end

     0   :  { %s3140_s21 = smov 0   ;;  %s3820_s0 = inlined_call_operand.vmem [shape: s32[2048,1], index: 0, kind: input, shape index: {}]   ;;  %s3821_s1 = inlined_call_operand.vmem [shape: s32[2048,1], index: 1, kind: input, shape index: {}]   ;;  %s3822_s2 = inlined_call_operand.vmem [shape: f32[128,32], index: 2, kind: input, shape index: {}]   ;;  %s3823_s3 = inlined_call_operand.vmem [shape: f32[1,32], index: 3, kind: input, shape index: {}]   ;;  %s3824_s4 = inlined_call_operand.vmem [shape: f32[32,128], index: 4, kind: input, shape index: {}]   ;;  %s3825_s5 = inlined_call_operand.vmem [shape: f32[1,128], index: 5, kind: input, shape index: {}]   ;;  %s3826_s6 = inlined_call_operand.vmem [shape: f32[2048,128], index: 6, kind: output, shape index: {}]  }
   0x1 LB: > { %s2496_s22 = sadd.s32 4294967295, %s3101_s21   ;;  %p2500_p0 = scmp.ge.s32.totalorder %s3101_s21, 1  ;;  %s3101_s21 = sphi %s3140_s21, %s16_s21  }
   0x2   : > { %p224_p1 = scmp.lt.s32.totalorder %s3101_s21, 5 }
   0x4   : > { %p225_p2 = pnand %p2500_p0, %p224_p1 }
   0x5   : > { %s2501_s23 = sshll.u32 (!%p225_p2), %s2496_s22, 6 }
   0x6   : > { %228 = sbr.rel (%p225_p2) target bundleno = 793 (0x319), region = 44  ;;  %p260_p3 = scmp.lt.s32.totalorder (!%p225_p2), %s2501_s23, 255 }
   0xb   : > { %v1190_v0 = vld [vmem:[%s3822_s2 + $0x78] sm:$0xff]  ;;  %v3103_v1 = vmov 0   ;;  %v1189_v2 = vld [vmem:[%s3822_s2 + $0x70] sm:$0xff]  ;;  %s3828_s23 = smov (!%p260_p3, %s2501_s23), 255  ;;  %v1188_v3 = vld [vmem:[%s3822_s2 + $0x68] sm:$0xff] }
   0xc   : > { %3094 = vset.pattern.permute.xlu1 %v3103_v1  ;;  %3093 = vset.pattern.permute.xlu0 %v3103_v1  ;;  %s3157_s30 = sshll.u32 %s3828_s23, 3  ;;  %v1187_v4 = vld [vmem:[%s3822_s2 + $0x60] sm:$0xff]  ;;  %v1186_v9 = vld [vmem:[%s3822_s2 + $0x58] sm:$0xff]  ;;  %v1185_v13 = vld [vmem:[%s3822_s2 + $0x50] sm:$0xff] }
   0xd   : > { %2851 = vmatprep.subr.mxu0 %v1190_v0  ;;  %s3163_s9 = scalar_lea.vmem %s3820_s0, %s3157_s30  ;;  %s3169_s12 = scalar_lea.vmem %s3821_s1, %s3157_s30  ;;  %v1184_v17 = vld [vmem:[%s3822_s2 + $0x48] sm:$0xff]  ;;  %v1183_v19 = vld [vmem:[%s3822_s2 + $0x40] sm:$0xff]  ;;  %v1182_v22 = vld [vmem:[%s3822_s2 + $0x38] sm:$0xff] }
   0xe   : > { %2852 = vmatpush3.msra.mxu0 %v1190_v0  ;;  %v278_v5 = vld [vmem:[%s3163_s9 + $0x8] sm:$0xff]  ;;  %v277_v6 = vld [vmem:[%s3163_s9] sm:$0xff]  ;;  %v279_v10 = vld [vmem:[%s3163_s9 + $0x10] sm:$0xff]  ;;  %s3661_s10 = scalar_lea.vmem %s3826_s6, %s3157_s30 }
   0xf   : > { %2853 = vmatprep.subr.mxu0 %v1189_v2  ;;  %v342_v7 = vld [vmem:[%s3169_s12 + $0x8] sm:$0xff]  ;;  %411 = vperm.xlu1 %3094, %v278_v5   ;;  %v343_v11 = vld [vmem:[%s3169_s12 + $0x10] sm:$0xff]  ;;  %v341_v12 = vld [vmem:[%s3169_s12] sm:$0xff] }
  0x10   : > { %2854 = vmatpush3.msra.mxu0 %v1189_v2  ;;  %408 = vperm.xlu0 %3093, %v277_v6   ;;  %v664_v8 = vadd.s32 64, %v342_v7  ;;  %v665_v14 = vadd.s32 64, %v343_v11  ;;  %v663_v15 = vadd.s32 64, %v341_v12  ;;  %v344_v16 = vld [vmem:[%s3169_s12 + $0x18] sm:$0xff]  ;;  %v345_v21 = vld [vmem:[%s3169_s12 + $0x20] sm:$0xff]  ;;  %v346_v25 = vld [vmem:[%s3169_s12 + $0x28] sm:$0xff] }
  0x11   : > { %2855 = vmatprep.subr.mxu0 %v1188_v3  ;;  %v666_v18 = vadd.s32 64, %v344_v16  ;;  %v280_v20 = vld [vmem:[%s3163_s9 + $0x18] sm:$0xff]  ;;  %v667_v23 = vadd.s32 64, %v345_v21  ;;  %v281_v24 = vld [vmem:[%s3163_s9 + $0x20] sm:$0xff]  ;;  %v1181_v26 = vld [vmem:[%s3822_s2 + $0x30] sm:$0xff]  ;;  %v668_v27 = vadd.s32 64, %v346_v25 }
  0x12   : > { %2856 = vmatpush3.msra.mxu0 %v1188_v3  ;;  %v1180_v28 = vld [vmem:[%s3822_s2 + $0x28] sm:$0xff]  ;;  %v347_v30 = vld [vmem:[%s3169_s12 + $0x30] sm:$0xff]  ;;  %v1179_v31 = vld [vmem:[%s3822_s2 + $0x20] sm:$0xff] }
  0x13   : > { %2857 = vmatprep.subr.mxu0 %v1187_v4  ;;  %731 = vperm.xlu1 %3094, %v664_v8   ;;  %v282_v29 = vld [vmem:[%s3163_s9 + $0x28] sm:$0xff]  ;;  %v669_v32 = vadd.s32 64, %v347_v30  ;;  %v283_v33 = vld [vmem:[%s3163_s9 + $0x30] sm:$0xff]  ;;  %v348_v34 = vld [vmem:[%s3169_s12 + $0x38] sm:$0xff] }
  0x14   : > { %2858 = vmatpush3.msra.mxu0 %v1187_v4  ;;  %414 = vperm.xlu0 %3093, %v279_v10   ;;  %v1178_v35 = vld [vmem:[%s3822_s2 + $0x18] sm:$0xff]  ;;  %v670_v36 = vadd.s32 64, %v348_v34  ;;  %v1177_v37 = vld [vmem:[%s3822_s2 + $0x10] sm:$0xff]  ;;  %v349_v39 = vld [vmem:[%s3169_s12 + $0x40] sm:$0xff] }
  0x15   : > { %2859 = vmatprep.subr.mxu0 %v1186_v9  ;;  %v284_v38 = vld [vmem:[%s3163_s9 + $0x38] sm:$0xff]  ;;  %v1176_v40 = vld [vmem:[%s3822_s2 + $0x8] sm:$0xff]  ;;  %v671_v41 = vadd.s32 64, %v349_v39  ;;  %v285_v42 = vld [vmem:[%s3163_s9 + $0x40] sm:$0xff] }
  0x16   : > { %2860 = vmatpush3.msra.mxu0 %v1186_v9  ;;  %v350_v43 = vld [vmem:[%s3169_s12 + $0x48] sm:$0xff]  ;;  %v1175_v44 = vld [vmem:[%s3822_s2] sm:$0xff]  ;;  %v351_v47 = vld [vmem:[%s3169_s12 + $0x50] sm:$0xff] }
  0x17   : > { %2861 = vmatprep.subr.mxu0 %v1185_v13  ;;  %734 = vperm.xlu1 %3094, %v665_v14   ;;  %v672_v45 = vadd.s32 64, %v350_v43  ;;  %v286_v46 = vld [vmem:[%s3163_s9 + $0x48] sm:$0xff]  ;;  %v673_v48 = vadd.s32 64, %v351_v47  ;;  %v287_v49 = vld [vmem:[%s3163_s9 + $0x50] sm:$0xff]  ;;  %v352_v50 = vld [vmem:[%s3169_s12 + $0x58] sm:$0xff] }
  0x18   : > { %2862 = vmatpush3.msra.mxu0 %v1185_v13  ;;  %728 = vperm.xlu0 %3093, %v663_v15   ;;  %v674_v51 = vadd.s32 64, %v352_v50  ;;  %v288_v52 = vld [vmem:[%s3163_s9 + $0x58] sm:$0xff]  ;;  %v353_v53 = vld [vmem:[%s3169_s12 + $0x60] sm:$0xff]  ;;  %v354_v56 = vld [vmem:[%s3169_s12 + $0x68] sm:$0xff] }
  0x19   : > { %2863 = vmatprep.subr.mxu0 %v1184_v17  ;;  %v675_v54 = vadd.s32 64, %v353_v53  ;;  %v289_v55 = vld [vmem:[%s3163_s9 + $0x60] sm:$0xff]  ;;  %v676_v57 = vadd.s32 64, %v354_v56  ;;  %v290_v58 = vld [vmem:[%s3163_s9 + $0x68] sm:$0xff]  ;;  %v355_v59 = vld [vmem:[%s3169_s12 + $0x70] sm:$0xff]  ;;  %v405_v53 = vlaneseq }
  0x1a   : > { %2864 = vmatpush3.msra.mxu0 %v1184_v17  ;;  %v677_v60 = vadd.s32 64, %v355_v59  ;;  %v291_v61 = vld [vmem:[%s3163_s9 + $0x70] sm:$0xff]  ;;  %v356_v62 = vld [vmem:[%s3169_s12 + $0x78] sm:$0xff]  ;;  %v357_v1 = vld [vmem:[%s3169_s12 + $0x80] sm:$0xff] }
  0x1b   : > { %2865 = vmatprep.subr.mxu0 %v1183_v19  ;;  %737 = vperm.xlu1 %3094, %v666_v18   ;;  %v678_v63 = vadd.s32 64, %v356_v62  ;;  %v292_v0 = vld [vmem:[%s3163_s9 + $0x78] sm:$0xff]  ;;  %v679_v2 = vadd.s32 64, %v357_v1  ;;  %v293_v3 = vld [vmem:[%s3163_s9 + $0x80] sm:$0xff]  ;;  %v358_v4 = vld [vmem:[%s3169_s12 + $0x88] sm:$0xff]  ;;  %v3277_v59 = vand.u32 127, %v405_v53 }
  0x1c   : > { %417 = vperm.xlu0 %3093, %v280_v20   ;;  %2866 = vmatpush3.msra.mxu0 %v1183_v19  ;;  %v680_v5 = vadd.s32 64, %v358_v4  ;;  %v294_v6 = vld [vmem:[%s3163_s9 + $0x88] sm:$0xff]  ;;  %v359_v7 = vld [vmem:[%s3169_s12 + $0x90] sm:$0xff]  ;;  %v360_v10 = vld [vmem:[%s3169_s12 + $0x98] sm:$0xff] }
  0x1d   : > { %2867 = vmatprep.subr.mxu0 %v1182_v22  ;;  %v681_v8 = vadd.s32 64, %v359_v7  ;;  %v295_v9 = vld [vmem:[%s3163_s9 + $0x90] sm:$0xff]  ;;  %v682_v11 = vadd.s32 64, %v360_v10  ;;  %v296_v12 = vld [vmem:[%s3163_s9 + $0x98] sm:$0xff]  ;;  %v361_v13 = vld [vmem:[%s3169_s12 + $0xa0] sm:$0xff] }
  0x1e   : > { %2868 = vmatpush3.msra.mxu0 %v1182_v22  ;;  %v683_v14 = vadd.s32 64, %v361_v13  ;;  %v297_v15 = vld [vmem:[%s3163_s9 + $0xa0] sm:$0xff]  ;;  %v362_v16 = vld [vmem:[%s3169_s12 + $0xa8] sm:$0xff]  ;;  %v363_v19 = vld [vmem:[%s3169_s12 + $0xb0] sm:$0xff] }
  0x1f   : > { %740 = vperm.xlu1 %3094, %v667_v23   ;;  %2869 = vmatprep.subr.mxu0 %v1181_v26  ;;  %v684_v17 = vadd.s32 64, %v362_v16  ;;  %v298_v18 = vld [vmem:[%s3163_s9 + $0xa8] sm:$0xff]  ;;  %v685_v20 = vadd.s32 64, %v363_v19  ;;  %v299_v21 = vld [vmem:[%s3163_s9 + $0xb0] sm:$0xff]  ;;  %v364_v22 = vld [vmem:[%s3169_s12 + $0xb8] sm:$0xff] }
  0x20   : > { %420 = vperm.xlu0 %3093, %v281_v24   ;;  %2870 = vmatpush3.msra.mxu0 %v1181_v26  ;;  %v686_v23 = vadd.s32 64, %v364_v22  ;;  %v300_v24 = vld [vmem:[%s3163_s9 + $0xb8] sm:$0xff]  ;;  %v365_v25 = vld [vmem:[%s3169_s12 + $0xc0] sm:$0xff]  ;;  %v302_v30 = vld [vmem:[%s3163_s9 + $0xc8] sm:$0xff] }
  0x21   : > { %2871 = vmatprep.subr.mxu0 %v1180_v28  ;;  %v687_v26 = vadd.s32 64, %v365_v25  ;;  %v368_v34 = vld [vmem:[%s3169_s12 + $0xd8] sm:$0xff]  ;;  %v305_v39 = vld [vmem:[%s3163_s9 + $0xe0] sm:$0xff]  ;;  %v371_v43 = vld [vmem:[%s3169_s12 + $0xf0] sm:$0xff] }
  0x22   : > { %2872 = vmatpush3.msra.mxu0 %v1180_v28  ;;  %v366_v28 = vld [vmem:[%s3169_s12 + $0xc8] sm:$0xff]  ;;  %v376_v1 = vld [vmem:[%s3169_s12 + $0x118] sm:$0xff]  ;;  %v377_v7 = vld [vmem:[%s3169_s12 + $0x120] sm:$0xff] }
  0x23   : > { %743 = vperm.xlu1 %3094, %v668_v27   ;;  %2873 = vmatprep.subr.mxu0 %v1179_v31  ;;  %v301_v27 = vld [vmem:[%s3163_s9 + $0xc0] sm:$0xff]  ;;  %v380_v22 = vld [vmem:[%s3169_s12 + $0x138] sm:$0xff] }
  0x24   : > { %423 = vperm.xlu0 %3093, %v282_v29   ;;  %2874 = vmatpush3.msra.mxu0 %v1179_v31  ;;  %v688_v29 = vadd.s32 64, %v366_v28  ;;  %v367_v31 = vld [vmem:[%s3169_s12 + $0xd0] sm:$0xff]  ;;  %v313_v13 = vld [vmem:[%s3163_s9 + $0x120] sm:$0xff]  ;;  %v316_v28 = vld [vmem:[%s3163_s9 + $0x138] sm:$0xff] }
  0x25   : > { %2875 = vmatprep.subr.mxu0 %v1178_v35  ;;  %v321_v53 = vld [vmem:[%s3163_s9 + $0x160] sm:$0xff] }
  0x26   : > { %2876 = vmatpush3.msra.mxu0 %v1178_v35  ;;  %v690_v35 = vadd.s32 64, %v368_v34 }
  0x27   : > { %746 = vperm.xlu1 %3094, %v669_v32   ;;  %2877 = vmatprep.subr.mxu0 %v1177_v37  ;;  %v689_v32 = vadd.s32 64, %v367_v31 }
  0x28   : > { %426 = vperm.xlu0 %3093, %v283_v33   ;;  %2878 = vmatpush3.msra.mxu0 %v1177_v37  ;;  %v303_v33 = vld [vmem:[%s3163_s9 + $0xd0] sm:$0xff]  ;;  %v369_v37 = vld [vmem:[%s3169_s12 + $0xe0] sm:$0xff] }
  0x29   : > { %2879 = vmatprep.subr.mxu0 %v1176_v40 }
  0x2a   : > { %2880 = vmatpush3.msra.mxu0 %v1176_v40  ;;  %v370_v40 = vld [vmem:[%s3169_s12 + $0xe8] sm:$0xff] }
  0x2b   : > { %749 = vperm.xlu1 %3094, %v670_v36   ;;  %2881 = vmatprep.subr.mxu0 %v1175_v44  ;;  %v304_v36 = vld [vmem:[%s3163_s9 + $0xd8] sm:$0xff] }
  0x2c   : > { %429 = vperm.xlu0 %3093, %v284_v38   ;;  %2882 = vmatpush3.msra.mxu0 %v1175_v44  ;;  %v691_v38 = vadd.s32 64, %v369_v37  ;;  %v693_v44 = vadd.s32 64, %v371_v43  ;;  %v383_v37 = vld [vmem:[%s3169_s12 + $0x150] sm:$0xff] }
  0x2d   : > { %v319_v43 = vld [vmem:[%s3163_s9 + $0x150] sm:$0xff] }
  0x2f   : > { %752 = vperm.xlu1 %3094, %v671_v41   ;;  %v692_v41 = vadd.s32 64, %v370_v40 }
  0x30   : > { %432 = vperm.xlu0 %3093, %v285_v42   ;;  %v306_v42 = vld [vmem:[%s3163_s9 + $0xe8] sm:$0xff] }
  0x33   : > { %755 = vperm.xlu1 %3094, %v672_v45   ;;  %v307_v45 = vld [vmem:[%s3163_s9 + $0xf0] sm:$0xff] }
  0x34   : > { %435 = vperm.xlu0 %3093, %v286_v46   ;;  %v372_v46 = vld [vmem:[%s3169_s12 + $0xf8] sm:$0xff] }
  0x35   : > { %v694_v47 = vadd.s32 64, %v372_v46 }
  0x37   : > { %758 = vperm.xlu1 %3094, %v673_v48   ;;  %v308_v48 = vld [vmem:[%s3163_s9 + $0xf8] sm:$0xff] }
  0x38   : > { %438 = vperm.xlu0 %3093, %v287_v49   ;;  %v373_v49 = vld [vmem:[%s3169_s12 + $0x100] sm:$0xff] }
  0x3b   : > { %761 = vperm.xlu1 %3094, %v674_v51  }
  0x3c   : > { %441 = vperm.xlu0 %3093, %v288_v52   ;;  %v695_v52 = vadd.s32 64, %v373_v49 }
  0x3f   : > { %764 = vperm.xlu1 %3094, %v675_v54   ;;  %v309_v54 = vld [vmem:[%s3163_s9 + $0x100] sm:$0xff] }
  0x40   : > { %444 = vperm.xlu0 %3093, %v289_v55   ;;  %v374_v55 = vld [vmem:[%s3169_s12 + $0x108] sm:$0xff] }
  0x43   : > { %767 = vperm.xlu1 %3094, %v676_v57  }
  0x44   : > { %447 = vperm.xlu0 %3093, %v290_v58   ;;  %v696_v58 = vadd.s32 64, %v374_v55 }
  0x47   : > { %770 = vperm.xlu1 %3094, %v677_v60   ;;  %v310_v60 = vld [vmem:[%s3163_s9 + $0x108] sm:$0xff] }
  0x48   : > { %450 = vperm.xlu0 %3093, %v291_v61   ;;  %v375_v61 = vld [vmem:[%s3169_s12 + $0x110] sm:$0xff] }
  0x4b   : > { %773 = vperm.xlu1 %3094, %v678_v63  }
  0x4c   : > { %453 = vperm.xlu0 %3093, %v292_v0   ;;  %v697_v0 = vadd.s32 64, %v375_v61 }
  0x4f   : > { %776 = vperm.xlu1 %3094, %v679_v2   ;;  %v311_v2 = vld [vmem:[%s3163_s9 + $0x110] sm:$0xff] }
  0x50   : > { %456 = vperm.xlu0 %3093, %v293_v3   ;;  %v3104_v3 = vmov 1.0  }
  0x53   : > { %779 = vperm.xlu1 %3094, %v680_v5  }
  0x54   : > { %459 = vperm.xlu0 %3093, %v294_v6   ;;  %v698_v6 = vadd.s32 64, %v376_v1 }
  0x57   : > { %782 = vperm.xlu1 %3094, %v681_v8   ;;  %v312_v8 = vld [vmem:[%s3163_s9 + $0x118] sm:$0xff] }
  0x58   : > { %462 = vperm.xlu0 %3093, %v295_v9  }
  0x5b   : > { %785 = vperm.xlu1 %3094, %v682_v11   ;;  %v699_v11 = vadd.s32 64, %v377_v7 }
  0x5c   : > { %465 = vperm.xlu0 %3093, %v296_v12   ;;  %v378_v12 = vld [vmem:[%s3169_s12 + $0x128] sm:$0xff] }
  0x5d   : > { %v700_v16 = vadd.s32 64, %v378_v12 }
  0x5f   : > { %788 = vperm.xlu1 %3094, %v683_v14  }
  0x60   : > { %468 = vperm.xlu0 %3093, %v297_v15  }
  0x63   : > { %791 = vperm.xlu1 %3094, %v684_v17   ;;  %v379_v17 = vld [vmem:[%s3169_s12 + $0x130] sm:$0xff] }
  0x64   : > { %471 = vperm.xlu0 %3093, %v298_v18   ;;  %v314_v18 = vld [vmem:[%s3163_s9 + $0x128] sm:$0xff] }
  0x67   : > { %794 = vperm.xlu1 %3094, %v685_v20  }
  0x68   : > { %474 = vperm.xlu0 %3093, %v299_v21   ;;  %v701_v21 = vadd.s32 64, %v379_v17 }
  0x6b   : > { %797 = vperm.xlu1 %3094, %v686_v23   ;;  %v315_v23 = vld [vmem:[%s3163_s9 + $0x130] sm:$0xff] }
  0x6c   : > { %477 = vperm.xlu0 %3093, %v300_v24  }
  0x6f   : > { %800 = vperm.xlu1 %3094, %v687_v26   ;;  %v702_v26 = vadd.s32 64, %v380_v22 }
  0x70   : > { %480 = vperm.xlu0 %3093, %v301_v27   ;;  %v381_v27 = vld [vmem:[%s3169_s12 + $0x140] sm:$0xff] }
  0x71   : > { %v703_v31 = vadd.s32 64, %v381_v27  ;;  %v328_v27 = vld [vmem:[%s3163_s9 + $0x198] sm:$0xff] }
  0x73   : > { %803 = vperm.xlu1 %3094, %v688_v29  }
  0x74   : > { %483 = vperm.xlu0 %3093, %v302_v30  }
  0x77   : > { %806 = vperm.xlu1 %3094, %v689_v32   ;;  %v382_v32 = vld [vmem:[%s3169_s12 + $0x148] sm:$0xff] }
  0x78   : > { %486 = vperm.xlu0 %3093, %v303_v33   ;;  %v317_v33 = vld [vmem:[%s3163_s9 + $0x140] sm:$0xff] }
  0x7b   : > { %809 = vperm.xlu1 %3094, %v690_v35  }
  0x7c   : > { %489 = vperm.xlu0 %3093, %v304_v36   ;;  %v704_v36 = vadd.s32 64, %v382_v32  ;;  %v1776_v32 = vld [vmem:[%s3824_s4 + $0x8] sm:$0xff] }
  0x7f   : > { %812 = vperm.xlu1 %3094, %v691_v38   ;;  %v318_v38 = vld [vmem:[%s3163_s9 + $0x148] sm:$0xff] }
  0x80   : > { %492 = vperm.xlu0 %3093, %v305_v39  }
  0x83   : > { %815 = vperm.xlu1 %3094, %v692_v41   ;;  %v705_v41 = vadd.s32 64, %v383_v37 }
  0x84   : > { %495 = vperm.xlu0 %3093, %v306_v42   ;;  %v384_v42 = vld [vmem:[%s3169_s12 + $0x158] sm:$0xff] }
  0x85   : > { %v706_v46 = vadd.s32 64, %v384_v42 }
  0x87   : > { %818 = vperm.xlu1 %3094, %v693_v44  }
  0x88   : > { %498 = vperm.xlu0 %3093, %v307_v45  }
  0x8a   : > { %v412_v50 = vpop.permute.xlu1 %411 }
  0x8b   : > { %v409_v51 = vpop.permute.xlu0 %408  ;;  %821 = vperm.xlu1 %3094, %v694_v47   ;;  %vm600_vm4 = vcmp.eq.s32.totalorder %v3277_v59, %v412_v50  ;;  %v385_v47 = vld [vmem:[%s3169_s12 + $0x160] sm:$0xff] }
  0x8c   : > { %501 = vperm.xlu0 %3093, %v308_v48   ;;  %vm599_vm3 = vcmp.eq.s32.totalorder %v3277_v59, %v409_v51  ;;  %v320_v48 = vld [vmem:[%s3163_s9 + $0x158] sm:$0xff]  ;;  %v707_v51 = vadd.s32 64, %v385_v47 }
  0x8e   : > { %v732_v56 = vpop.permute.xlu1 %731 }
  0x8f   : > { %v415_v57 = vpop.permute.xlu0 %414  ;;  %824 = vperm.xlu1 %3094, %v695_v52   ;;  %vm920_vm0 = vcmp.eq.s32.totalorder %v3277_v59, %v732_v56  ;;  %v386_v52 = vld [vmem:[%s3169_s12 + $0x168] sm:$0xff] }
  0x90   : > { %504 = vperm.xlu0 %3093, %v309_v54   ;;  %vm984_vm6 = vmor %vm600_vm4, %vm920_vm0  ;;  %vm601_vm7 = vcmp.eq.s32.totalorder %v3277_v59, %v415_v57  ;;  %v708_v56 = vadd.s32 64, %v386_v52  ;;  %v387_v57 = vld [vmem:[%s3169_s12 + $0x170] sm:$0xff] }
  0x92   : > { %v735_v62 = vpop.permute.xlu1 %734 }
  0x93   : > { %v729_v63 = vpop.permute.xlu0 %728  ;;  %827 = vperm.xlu1 %3094, %v696_v58   ;;  %vm921_vm2 = vcmp.eq.s32.totalorder %v3277_v59, %v735_v62  ;;  %v322_v58 = vld [vmem:[%s3163_s9 + $0x168] sm:$0xff]  ;;  %v709_v62 = vadd.s32 64, %v387_v57 }
  0x94   : > { %507 = vperm.xlu0 %3093, %v310_v60   ;;  %vm919_vm1 = vcmp.eq.s32.totalorder %v3277_v59, %v729_v63  ;;  %vm985_vm8 = vmor %vm601_vm7, %vm921_vm2  ;;  %v388_v63 = vld [vmem:[%s3169_s12 + $0x178] sm:$0xff] }
  0x95   : > { %vm983_vm5 = vmor %vm599_vm3, %vm919_vm1 }
  0x96   : > { %2883 = vmatprep.mubr.msk.f32.mxu0 %vm983_vm5, %v3104_v3  ;;  %v738_v4 = vpop.permute.xlu1 %737 }
  0x97   : > { %v418_v5 = vpop.permute.xlu0 %417  ;;  %vm922_vm9 = vcmp.eq.s32.totalorder %v3277_v59, %v738_v4  ;;  %2884 = vmatmul.mubr.msk.f32.vlgmr.msra.gmra.mxu0 %vm984_vm6, %v3104_v3  ;;  %830 = vperm.xlu1 %3094, %v697_v0   ;;  %v323_v0 = vld [vmem:[%s3163_s9 + $0x170] sm:$0xff]  ;;  %v710_v4 = vadd.s32 64, %v388_v63 }
  0x98   : > { %vm602_vm10 = vcmp.eq.s32.totalorder %v3277_v59, %v418_v5  ;;  %510 = vperm.xlu0 %3093, %v311_v2   ;;  %2886 = vmatprep.mubr.msk.f32.mxu0 %vm985_vm8, %v3104_v3  ;;  %v389_v5 = vld [vmem:[%s3169_s12 + $0x180] sm:$0xff] }
  0x99   : > { %vm986_vm11 = vmor %vm602_vm10, %vm922_vm9 }
  0x9a   : > { %v741_v9 = vpop.permute.xlu1 %740 }
  0x9b   : > { %v421_v10 = vpop.permute.xlu0 %420  ;;  %vm923_vm12 = vcmp.eq.s32.totalorder %v3277_v59, %v741_v9  ;;  %2887 = vmatmul.mubr.msk.f32.gmra.mxu0 %vm986_vm11, %v3104_v3  ;;  %833 = vperm.xlu1 %3094, %v698_v6   ;;  %v324_v6 = vld [vmem:[%s3163_s9 + $0x178] sm:$0xff]  ;;  %v711_v9 = vadd.s32 64, %v389_v5 }
  0x9c   : > { %vm603_vm13 = vcmp.eq.s32.totalorder %v3277_v59, %v421_v10  ;;  %513 = vperm.xlu0 %3093, %v312_v8   ;;  %v390_v10 = vld [vmem:[%s3169_s12 + $0x188] sm:$0xff] }
  0x9d   : > { %vm987_vm14 = vmor %vm603_vm13, %vm923_vm12 }
  0x9e   : > { %2889 = vmatprep.mubr.msk.f32.mxu0 %vm987_vm14, %v3104_v3  ;;  %v744_v14 = vpop.permute.xlu1 %743 }
  0x9f   : > { %v424_v15 = vpop.permute.xlu0 %423  ;;  %vm924_vm15 = vcmp.eq.s32.totalorder %v3277_v59, %v744_v14  ;;  %836 = vperm.xlu1 %3094, %v699_v11   ;;  %v325_v11 = vld [vmem:[%s3163_s9 + $0x180] sm:$0xff]  ;;  %v712_v14 = vadd.s32 64, %v390_v10 }
  0xa0   : > { %vm604_vm0 = vcmp.eq.s32.totalorder %v3277_v59, %v424_v15  ;;  %516 = vperm.xlu0 %3093, %v313_v13   ;;  %v391_v15 = vld [vmem:[%s3169_s12 + $0x190] sm:$0xff] }
  0xa1   : > { %vm988_vm1 = vmor %vm604_vm0, %vm924_vm15 }
  0xa2   : > { %2890 = vmatmul.mubr.msk.f32.gmra.mxu0 %vm988_vm1, %v3104_v3  ;;  %v747_v19 = vpop.permute.xlu1 %746 }
  0xa3   : > { %v427_v20 = vpop.permute.xlu0 %426  ;;  %vm925_vm2 = vcmp.eq.s32.totalorder %v3277_v59, %v747_v19  ;;  %839 = vperm.xlu1 %3094, %v700_v16   ;;  %v326_v16 = vld [vmem:[%s3163_s9 + $0x188] sm:$0xff]  ;;  %v713_v19 = vadd.s32 64, %v391_v15 }
  0xa4   : > { %vm605_vm3 = vcmp.eq.s32.totalorder %v3277_v59, %v427_v20  ;;  %519 = vperm.xlu0 %3093, %v314_v18   ;;  %v392_v20 = vld [vmem:[%s3169_s12 + $0x198] sm:$0xff] }
  0xa5   : > { %vm989_vm4 = vmor %vm605_vm3, %vm925_vm2 }
  0xa6   : > { %2892 = vmatprep.mubr.msk.f32.mxu0 %vm989_vm4, %v3104_v3  ;;  %v750_v24 = vpop.permute.xlu1 %749 }
  0xa7   : > { %v430_v25 = vpop.permute.xlu0 %429  ;;  %vm926_vm5 = vcmp.eq.s32.totalorder %v3277_v59, %v750_v24  ;;  %842 = vperm.xlu1 %3094, %v701_v21   ;;  %v327_v21 = vld [vmem:[%s3163_s9 + $0x190] sm:$0xff]  ;;  %v714_v24 = vadd.s32 64, %v392_v20 }
  0xa8   : > { %vm606_vm6 = vcmp.eq.s32.totalorder %v3277_v59, %v430_v25  ;;  %522 = vperm.xlu0 %3093, %v315_v23   ;;  %v1778_v25 = vld [vmem:[%s3824_s4 + $0x18] sm:$0xff] }
  0xa9   : > { %vm990_vm7 = vmor %vm606_vm6, %vm926_vm5  ;;  %2979 = vmatprep.subr.mxu1 %v1778_v25 }
  0xaa   : > { %2893 = vmatmul.mubr.msk.f32.gmra.mxu0 %vm990_vm7, %v3104_v3  ;;  %v753_v29 = vpop.permute.xlu1 %752  ;;  %2980 = vmatpush3.msra.mxu1 %v1778_v25 }
  0xab   : > { %v433_v30 = vpop.permute.xlu0 %432  ;;  %vm927_vm8 = vcmp.eq.s32.totalorder %v3277_v59, %v753_v29  ;;  %845 = vperm.xlu1 %3094, %v702_v26   ;;  %v393_v26 = vld [vmem:[%s3169_s12 + $0x1a0] sm:$0xff] }
  0xac   : > { %vm607_vm9 = vcmp.eq.s32.totalorder %v3277_v59, %v433_v30  ;;  %525 = vperm.xlu0 %3093, %v316_v28   ;;  %v1777_v28 = vld [vmem:[%s3824_s4 + $0x10] sm:$0xff] }
  0xad   : > { %vm991_vm10 = vmor %vm607_vm9, %vm927_vm8  ;;  %2981 = vmatprep.subr.mxu1 %v1777_v28 }
  0xae   : > { %2895 = vmatprep.mubr.msk.f32.mxu0 %vm991_vm10, %v3104_v3  ;;  %v756_v34 = vpop.permute.xlu1 %755  ;;  %2982 = vmatpush3.msra.mxu1 %v1777_v28 }
  0xaf   : > { %v436_v35 = vpop.permute.xlu0 %435  ;;  %vm928_vm11 = vcmp.eq.s32.totalorder %v3277_v59, %v756_v34  ;;  %848 = vperm.xlu1 %3094, %v703_v31   ;;  %v715_v31 = vadd.s32 64, %v393_v26  ;;  %2983 = vmatprep.subr.mxu1 %v1776_v32  ;;  %v329_v34 = vld [vmem:[%s3163_s9 + $0x1a0] sm:$0xff] }
  0xb0   : > { %vm608_vm12 = vcmp.eq.s32.totalorder %v3277_v59, %v436_v35  ;;  %528 = vperm.xlu0 %3093, %v317_v33   ;;  %v394_v33 = vld [vmem:[%s3169_s12 + $0x1a8] sm:$0xff]  ;;  %2984 = vmatpush3.msra.mxu1 %v1776_v32  ;;  %v1775_v35 = vld [vmem:[%s3824_s4] sm:$0xff] }
  0xb1   : > { %vm992_vm13 = vmor %vm608_vm12, %vm928_vm11  ;;  %2985 = vmatprep.subr.mxu1 %v1775_v35 }
  0xb2   : > { %2896 = vmatmul.mubr.msk.f32.gmra.mxu0 %vm992_vm13, %v3104_v3  ;;  %v759_v39 = vpop.permute.xlu1 %758  ;;  %2986 = vmatpush3.msra.mxu1 %v1775_v35 }
  0xb3   : > { %v439_v40 = vpop.permute.xlu0 %438  ;;  %vm929_vm14 = vcmp.eq.s32.totalorder %v3277_v59, %v759_v39  ;;  %851 = vperm.xlu1 %3094, %v704_v36   ;;  %v395_v39 = vld [vmem:[%s3169_s12 + $0x1b0] sm:$0xff] }
  0xb4   : > { %vm609_vm15 = vcmp.eq.s32.totalorder %v3277_v59, %v439_v40  ;;  %531 = vperm.xlu0 %3093, %v318_v38   ;;  %v716_v38 = vadd.s32 64, %v394_v33  ;;  %v330_v40 = vld [vmem:[%s3163_s9 + $0x1a8] sm:$0xff] }
  0xb5   : > { %vm993_vm0 = vmor %vm609_vm15, %vm929_vm14 }
  0xb6   : > { %2898 = vmatprep.mubr.msk.f32.mxu0 %vm993_vm0, %v3104_v3  ;;  %v762_v44 = vpop.permute.xlu1 %761 }
  0xb7   : > { %v442_v45 = vpop.permute.xlu0 %441  ;;  %vm930_vm1 = vcmp.eq.s32.totalorder %v3277_v59, %v762_v44  ;;  %854 = vperm.xlu1 %3094, %v705_v41   ;;  %v396_v44 = vld [vmem:[%s3169_s12 + $0x1b8] sm:$0xff] }
  0xb8   : > { %vm610_vm2 = vcmp.eq.s32.totalorder %v3277_v59, %v442_v45  ;;  %534 = vperm.xlu0 %3093, %v319_v43   ;;  %v717_v43 = vadd.s32 64, %v395_v39  ;;  %v331_v45 = vld [vmem:[%s3163_s9 + $0x1b0] sm:$0xff] }
  0xb9   : > { %vm994_vm3 = vmor %vm610_vm2, %vm930_vm1 }
  0xba   : > { %2899 = vmatmul.mubr.msk.f32.gmra.mxu0 %vm994_vm3, %v3104_v3  ;;  %v765_v49 = vpop.permute.xlu1 %764 }
  0xbb   : > { %v445_v50 = vpop.permute.xlu0 %444  ;;  %vm931_vm4 = vcmp.eq.s32.totalorder %v3277_v59, %v765_v49  ;;  %857 = vperm.xlu1 %3094, %v706_v46   ;;  %v397_v49 = vld [vmem:[%s3169_s12 + $0x1c0] sm:$0xff] }
  0xbc   : > { %vm611_vm5 = vcmp.eq.s32.totalorder %v3277_v59, %v445_v50  ;;  %537 = vperm.xlu0 %3093, %v320_v48   ;;  %v718_v48 = vadd.s32 64, %v396_v44  ;;  %v332_v50 = vld [vmem:[%s3163_s9 + $0x1b8] sm:$0xff] }
  0xbd   : > { %vm995_vm6 = vmor %vm611_vm5, %vm931_vm4 }
  0xbe   : > { %2901 = vmatprep.mubr.msk.f32.mxu0 %vm995_vm6, %v3104_v3  ;;  %v768_v54 = vpop.permute.xlu1 %767 }
  0xbf   : > { %v448_v55 = vpop.permute.xlu0 %447  ;;  %vm932_vm7 = vcmp.eq.s32.totalorder %v3277_v59, %v768_v54  ;;  %860 = vperm.xlu1 %3094, %v707_v51   ;;  %v398_v54 = vld [vmem:[%s3169_s12 + $0x1c8] sm:$0xff] }
  0xc0   : > { %vm612_vm8 = vcmp.eq.s32.totalorder %v3277_v59, %v448_v55  ;;  %540 = vperm.xlu0 %3093, %v321_v53   ;;  %v719_v53 = vadd.s32 64, %v397_v49  ;;  %v333_v55 = vld [vmem:[%s3163_s9 + $0x1c0] sm:$0xff] }
  0xc1   : > { %vm996_vm9 = vmor %vm612_vm8, %vm932_vm7 }
  0xc2   : > { %2902 = vmatmul.mubr.msk.f32.gmra.mxu0 %vm996_vm9, %v3104_v3  ;;  %v771_v60 = vpop.permute.xlu1 %770 }
  0xc3   : > { %v451_v61 = vpop.permute.xlu0 %450  ;;  %vm933_vm10 = vcmp.eq.s32.totalorder %v3277_v59, %v771_v60  ;;  %863 = vperm.xlu1 %3094, %v708_v56   ;;  %v399_v60 = vld [vmem:[%s3169_s12 + $0x1d0] sm:$0xff] }
  0xc4   : > { %vm613_vm11 = vcmp.eq.s32.totalorder %v3277_v59, %v451_v61  ;;  %543 = vperm.xlu0 %3093, %v322_v58   ;;  %v720_v58 = vadd.s32 64, %v398_v54  ;;  %v334_v61 = vld [vmem:[%s3163_s9 + $0x1c8] sm:$0xff] }
  0xc5   : > { %vm997_vm12 = vmor %vm613_vm11, %vm933_vm10 }
  0xc6   : > { %2904 = vmatprep.mubr.msk.f32.mxu0 %vm997_vm12, %v3104_v3  ;;  %v774_v1 = vpop.permute.xlu1 %773 }
  0xc7   : > { %v454_v2 = vpop.permute.xlu0 %453  ;;  %vm934_vm13 = vcmp.eq.s32.totalorder %v3277_v59, %v774_v1  ;;  %866 = vperm.xlu1 %3094, %v709_v62   ;;  %v400_v1 = vld [vmem:[%s3169_s12 + $0x1d8] sm:$0xff] }
  0xc8   : > { %vm614_vm14 = vcmp.eq.s32.totalorder %v3277_v59, %v454_v2  ;;  %546 = vperm.xlu0 %3093, %v323_v0   ;;  %v721_v0 = vadd.s32 64, %v399_v60  ;;  %v335_v2 = vld [vmem:[%s3163_s9 + $0x1d0] sm:$0xff] }
  0xc9   : > { %vm998_vm15 = vmor %vm614_vm14, %vm934_vm13 }
  0xca   : > { %2905 = vmatmul.mubr.msk.f32.gmra.mxu0 %vm998_vm15, %v3104_v3  ;;  %v777_v7 = vpop.permute.xlu1 %776 }
  0xcb   : > { %v457_v8 = vpop.permute.xlu0 %456  ;;  %vm935_vm0 = vcmp.eq.s32.totalorder %v3277_v59, %v777_v7  ;;  %869 = vperm.xlu1 %3094, %v710_v4   ;;  %v401_v7 = vld [vmem:[%s3169_s12 + $0x1e0] sm:$0xff] }
  0xcc   : > { %vm615_vm1 = vcmp.eq.s32.totalorder %v3277_v59, %v457_v8  ;;  %549 = vperm.xlu0 %3093, %v324_v6   ;;  %v722_v6 = vadd.s32 64, %v400_v1  ;;  %v336_v8 = vld [vmem:[%s3163_s9 + $0x1d8] sm:$0xff] }
  0xcd   : > { %vm999_vm2 = vmor %vm615_vm1, %vm935_vm0 }
  0xce   : > { %2907 = vmatprep.mubr.msk.f32.mxu0 %vm999_vm2, %v3104_v3  ;;  %v780_v12 = vpop.permute.xlu1 %779 }
  0xcf   : > { %v460_v13 = vpop.permute.xlu0 %459  ;;  %vm936_vm3 = vcmp.eq.s32.totalorder %v3277_v59, %v780_v12  ;;  %872 = vperm.xlu1 %3094, %v711_v9   ;;  %v402_v12 = vld [vmem:[%s3169_s12 + $0x1e8] sm:$0xff] }
  0xd0   : > { %vm616_vm4 = vcmp.eq.s32.totalorder %v3277_v59, %v460_v13  ;;  %552 = vperm.xlu0 %3093, %v325_v11   ;;  %v723_v11 = vadd.s32 64, %v401_v7  ;;  %v337_v13 = vld [vmem:[%s3163_s9 + $0x1e0] sm:$0xff] }
  0xd1   : > { %vm1000_vm5 = vmor %vm616_vm4, %vm936_vm3 }
  0xd2   : > { %2908 = vmatmul.mubr.msk.f32.gmra.mxu0 %vm1000_vm5, %v3104_v3  ;;  %v783_v17 = vpop.permute.xlu1 %782 }
  0xd3   : > { %v463_v18 = vpop.permute.xlu0 %462  ;;  %vm937_vm6 = vcmp.eq.s32.totalorder %v3277_v59, %v783_v17  ;;  %875 = vperm.xlu1 %3094, %v712_v14   ;;  %v403_v17 = vld [vmem:[%s3169_s12 + $0x1f0] sm:$0xff] }
  0xd4   : > { %vm617_vm7 = vcmp.eq.s32.totalorder %v3277_v59, %v463_v18  ;;  %555 = vperm.xlu0 %3093, %v326_v16   ;;  %v724_v16 = vadd.s32 64, %v402_v12  ;;  %v338_v18 = vld [vmem:[%s3163_s9 + $0x1e8] sm:$0xff] }
  0xd5   : > { %vm1001_vm8 = vmor %vm617_vm7, %vm937_vm6 }
  0xd6   : > { %2910 = vmatprep.mubr.msk.f32.mxu0 %vm1001_vm8, %v3104_v3  ;;  %v786_v22 = vpop.permute.xlu1 %785 }
  0xd7   : > { %v466_v23 = vpop.permute.xlu0 %465  ;;  %vm938_vm9 = vcmp.eq.s32.totalorder %v3277_v59, %v786_v22  ;;  %878 = vperm.xlu1 %3094, %v713_v19   ;;  %v404_v22 = vld [vmem:[%s3169_s12 + $0x1f8] sm:$0xff] }
  0xd8   : > { %vm618_vm10 = vcmp.eq.s32.totalorder %v3277_v59, %v466_v23  ;;  %558 = vperm.xlu0 %3093, %v327_v21   ;;  %v725_v21 = vadd.s32 64, %v403_v17  ;;  %v339_v23 = vld [vmem:[%s3163_s9 + $0x1f0] sm:$0xff]  ;;  %v726_v26 = vadd.s32 64, %v404_v22 }
  0xd9   : > { %vm1002_vm11 = vmor %vm618_vm10, %vm938_vm9 }
  0xda   : > { %2911 = vmatmul.mubr.msk.f32.gmra.mxu0 %vm1002_vm11, %v3104_v3  ;;  %v789_v29 = vpop.permute.xlu1 %788 }
  0xdb   : > { %v469_v30 = vpop.permute.xlu0 %468  ;;  %vm939_vm12 = vcmp.eq.s32.totalorder %v3277_v59, %v789_v29  ;;  %881 = vperm.xlu1 %3094, %v714_v24  }
  0xdc   : > { %vm619_vm13 = vcmp.eq.s32.totalorder %v3277_v59, %v469_v30  ;;  %561 = vperm.xlu0 %3093, %v328_v27   ;;  %v340_v27 = vld [vmem:[%s3163_s9 + $0x1f8] sm:$0xff] }
  0xdd   : > { %vm1003_vm14 = vmor %vm619_vm13, %vm939_vm12 }
  0xde   : > { %2913 = vmatprep.mubr.msk.f32.mxu0 %vm1003_vm14, %v3104_v3  ;;  %v792_v36 = vpop.permute.xlu1 %791 }
  0xdf   : > { %v472_v37 = vpop.permute.xlu0 %471  ;;  %vm940_vm15 = vcmp.eq.s32.totalorder %v3277_v59, %v792_v36  ;;  %884 = vperm.xlu1 %3094, %v715_v31  }
  0xe0   : > { %vm620_vm0 = vcmp.eq.s32.totalorder %v3277_v59, %v472_v37  ;;  %564 = vperm.xlu0 %3093, %v329_v34  }
  0xe1   : > { %vm1004_vm1 = vmor %vm620_vm0, %vm940_vm15 }
  0xe2   : > { %2914 = vmatmul.mubr.msk.f32.gmra.mxu0 %vm1004_vm1, %v3104_v3  ;;  %v795_v41 = vpop.permute.xlu1 %794 }
  0xe3   : > { %v475_v42 = vpop.permute.xlu0 %474  ;;  %vm941_vm2 = vcmp.eq.s32.totalorder %v3277_v59, %v795_v41  ;;  %887 = vperm.xlu1 %3094, %v716_v38  }
  0xe4   : > { %vm621_vm3 = vcmp.eq.s32.totalorder %v3277_v59, %v475_v42  ;;  %567 = vperm.xlu0 %3093, %v330_v40  }
  0xe5   : > { %vm1005_vm4 = vmor %vm621_vm3, %vm941_vm2 }
  0xe6   : > { %2916 = vmatprep.mubr.msk.f32.mxu0 %vm1005_vm4, %v3104_v3  ;;  %v798_v46 = vpop.permute.xlu1 %797 }
  0xe7   : > { %v478_v47 = vpop.permute.xlu0 %477  ;;  %vm942_vm5 = vcmp.eq.s32.totalorder %v3277_v59, %v798_v46  ;;  %890 = vperm.xlu1 %3094, %v717_v43  }
  0xe8   : > { %vm622_vm6 = vcmp.eq.s32.totalorder %v3277_v59, %v478_v47  ;;  %570 = vperm.xlu0 %3093, %v331_v45  }
  0xe9   : > { %vm1006_vm7 = vmor %vm622_vm6, %vm942_vm5 }
  0xea   : > { %2917 = vmatmul.mubr.msk.f32.gmra.mxu0 %vm1006_vm7, %v3104_v3  ;;  %v801_v51 = vpop.permute.xlu1 %800 }
  0xeb   : > { %v481_v52 = vpop.permute.xlu0 %480  ;;  %vm943_vm8 = vcmp.eq.s32.totalorder %v3277_v59, %v801_v51  ;;  %893 = vperm.xlu1 %3094, %v718_v48  }
  0xec   : > { %vm623_vm9 = vcmp.eq.s32.totalorder %v3277_v59, %v481_v52  ;;  %573 = vperm.xlu0 %3093, %v332_v50  }
  0xed   : > { %vm1007_vm10 = vmor %vm623_vm9, %vm943_vm8 }
  0xee   : > { %2919 = vmatprep.mubr.msk.f32.mxu0 %vm1007_vm10, %v3104_v3  ;;  %v804_v56 = vpop.permute.xlu1 %803 }
  0xef   : > { %v484_v57 = vpop.permute.xlu0 %483  ;;  %vm944_vm11 = vcmp.eq.s32.totalorder %v3277_v59, %v804_v56  ;;  %896 = vperm.xlu1 %3094, %v719_v53  }
  0xf0   : > { %vm624_vm12 = vcmp.eq.s32.totalorder %v3277_v59, %v484_v57  ;;  %576 = vperm.xlu0 %3093, %v333_v55  }
  0xf1   : > { %vm1008_vm13 = vmor %vm624_vm12, %vm944_vm11 }
  0xf2   : > { %2920 = vmatmul.mubr.msk.f32.gmra.mxu0 %vm1008_vm13, %v3104_v3  ;;  %v807_v62 = vpop.permute.xlu1 %806 }
  0xf3   : > { %v487_v63 = vpop.permute.xlu0 %486  ;;  %vm945_vm14 = vcmp.eq.s32.totalorder %v3277_v59, %v807_v62  ;;  %899 = vperm.xlu1 %3094, %v720_v58  }
  0xf4   : > { %vm625_vm15 = vcmp.eq.s32.totalorder %v3277_v59, %v487_v63  ;;  %579 = vperm.xlu0 %3093, %v334_v61  }
  0xf5   : > { %vm1009_vm0 = vmor %vm625_vm15, %vm945_vm14 }
  0xf6   : > { %2922 = vmatprep.mubr.msk.f32.mxu0 %vm1009_vm0, %v3104_v3  ;;  %v810_v4 = vpop.permute.xlu1 %809 }
  0xf7   : > { %v490_v5 = vpop.permute.xlu0 %489  ;;  %vm946_vm1 = vcmp.eq.s32.totalorder %v3277_v59, %v810_v4  ;;  %902 = vperm.xlu1 %3094, %v721_v0   ;;  %v3507_v4 = vld [vmem:[%s3823_s3] ss:$0 sm:$0xff] }
  0xf8   : > { %vm626_vm2 = vcmp.eq.s32.totalorder %v3277_v59, %v490_v5  ;;  %582 = vperm.xlu0 %3093, %v335_v2  }
  0xf9   : > { %vm1010_vm3 = vmor %vm626_vm2, %vm946_vm1 }
  0xfa   : > { %2923 = vmatmul.mubr.msk.f32.gmra.mxu0 %vm1010_vm3, %v3104_v3  ;;  %v813_v9 = vpop.permute.xlu1 %812 }
  0xfb   : > { %v493_v10 = vpop.permute.xlu0 %492  ;;  %vm947_vm4 = vcmp.eq.s32.totalorder %v3277_v59, %v813_v9  ;;  %905 = vperm.xlu1 %3094, %v722_v6  }
  0xfc   : > { %vm627_vm5 = vcmp.eq.s32.totalorder %v3277_v59, %v493_v10  ;;  %585 = vperm.xlu0 %3093, %v336_v8  }
  0xfd   : > { %vm1011_vm6 = vmor %vm627_vm5, %vm947_vm4 }
  0xfe   : > { %2925 = vmatprep.mubr.msk.f32.mxu0 %vm1011_vm6, %v3104_v3  ;;  %v816_v14 = vpop.permute.xlu1 %815 }
  0xff   : > { %v496_v15 = vpop.permute.xlu0 %495  ;;  %vm948_vm7 = vcmp.eq.s32.totalorder %v3277_v59, %v816_v14  ;;  %908 = vperm.xlu1 %3094, %v723_v11  }
 0x100   : > { %vm628_vm8 = vcmp.eq.s32.totalorder %v3277_v59, %v496_v15  ;;  %588 = vperm.xlu0 %3093, %v337_v13  }
 0x101   : > { %vm1012_vm9 = vmor %vm628_vm8, %vm948_vm7 }
 0x102   : > { %2926 = vmatmul.mubr.msk.f32.gmra.mxu0 %vm1012_vm9, %v3104_v3  ;;  %v819_v19 = vpop.permute.xlu1 %818 }
 0x103   : > { %v499_v20 = vpop.permute.xlu0 %498  ;;  %vm949_vm10 = vcmp.eq.s32.totalorder %v3277_v59, %v819_v19  ;;  %911 = vperm.xlu1 %3094, %v724_v16  }
 0x104   : > { %vm629_vm11 = vcmp.eq.s32.totalorder %v3277_v59, %v499_v20  ;;  %591 = vperm.xlu0 %3093, %v338_v18  }
 0x105   : > { %vm1013_vm12 = vmor %vm629_vm11, %vm949_vm10 }
 0x106   : > { %2928 = vmatprep.mubr.msk.f32.mxu0 %vm1013_vm12, %v3104_v3  ;;  %v822_v24 = vpop.permute.xlu1 %821 }
 0x107   : > { %v502_v25 = vpop.permute.xlu0 %501  ;;  %vm950_vm13 = vcmp.eq.s32.totalorder %v3277_v59, %v822_v24  ;;  %914 = vperm.xlu1 %3094, %v725_v21  }
 0x108   : > { %vm630_vm14 = vcmp.eq.s32.totalorder %v3277_v59, %v502_v25  ;;  %594 = vperm.xlu0 %3093, %v339_v23  }
 0x109   : > { %vm1014_vm15 = vmor %vm630_vm14, %vm950_vm13 }
 0x10a   : > { %2929 = vmatmul.mubr.msk.f32.gmra.mxu0 %vm1014_vm15, %v3104_v3  ;;  %v825_v28 = vpop.permute.xlu1 %824 }
 0x10b   : > { %v505_v29 = vpop.permute.xlu0 %504  ;;  %vm951_vm0 = vcmp.eq.s32.totalorder %v3277_v59, %v825_v28  ;;  %917 = vperm.xlu1 %3094, %v726_v26  }
 0x10c   : > { %vm631_vm1 = vcmp.eq.s32.totalorder %v3277_v59, %v505_v29  ;;  %597 = vperm.xlu0 %3093, %v340_v27  }
 0x10d   : > { %vm1015_vm2 = vmor %vm631_vm1, %vm951_vm0 }
 0x10e   : > { %2931 = vmatprep.mubr.msk.f32.mxu0 %vm1015_vm2, %v3104_v3  ;;  %v828_v30 = vpop.permute.xlu1 %827 }
 0x10f   : > { %v508_v31 = vpop.permute.xlu0 %507  ;;  %vm952_vm3 = vcmp.eq.s32.totalorder %v3277_v59, %v828_v30 }
 0x110   : > { %vm632_vm4 = vcmp.eq.s32.totalorder %v3277_v59, %v508_v31 }
 0x111   : > { %vm1016_vm5 = vmor %vm632_vm4, %vm952_vm3 }
 0x112   : > { %2932 = vmatmul.mubr.msk.f32.gmra.mxu0 %vm1016_vm5, %v3104_v3  ;;  %v831_v32 = vpop.permute.xlu1 %830 }
 0x113   : > { %vm953_vm6 = vcmp.eq.s32.totalorder %v3277_v59, %v831_v32  ;;  %v511_v33 = vpop.permute.xlu0 %510 }
 0x114   : > { %vm633_vm7 = vcmp.eq.s32.totalorder %v3277_v59, %v511_v33 }
 0x115   : > { %vm1017_vm8 = vmor %vm633_vm7, %vm953_vm6 }
 0x116   : > { %2934 = vmatprep.mubr.msk.f32.mxu0 %vm1017_vm8, %v3104_v3  ;;  %v834_v34 = vpop.permute.xlu1 %833 }
 0x117   : > { %vm954_vm9 = vcmp.eq.s32.totalorder %v3277_v59, %v834_v34  ;;  %v514_v35 = vpop.permute.xlu0 %513 }
 0x118   : > { %vm634_vm10 = vcmp.eq.s32.totalorder %v3277_v59, %v514_v35 }
 0x119   : > { %vm1018_vm11 = vmor %vm634_vm10, %vm954_vm9 }
 0x11a   : > { %2935 = vmatmul.mubr.msk.f32.gmra.mxu0 %vm1018_vm11, %v3104_v3  ;;  %v837_v36 = vpop.permute.xlu1 %836 }
 0x11b   : > { %vm955_vm12 = vcmp.eq.s32.totalorder %v3277_v59, %v837_v36  ;;  %v517_v37 = vpop.permute.xlu0 %516 }
 0x11c   : > { %vm635_vm13 = vcmp.eq.s32.totalorder %v3277_v59, %v517_v37 }
 0x11d   : > { %vm1019_vm14 = vmor %vm635_vm13, %vm955_vm12 }
 0x11e   : > { %2937 = vmatprep.mubr.msk.f32.mxu0 %vm1019_vm14, %v3104_v3  ;;  %v840_v38 = vpop.permute.xlu1 %839 }
 0x11f   : > { %vm956_vm15 = vcmp.eq.s32.totalorder %v3277_v59, %v840_v38  ;;  %v520_v39 = vpop.permute.xlu0 %519 }
 0x120   : > { %vm636_vm0 = vcmp.eq.s32.totalorder %v3277_v59, %v520_v39 }
 0x121   : > { %vm1020_vm1 = vmor %vm636_vm0, %vm956_vm15 }
 0x122   : > { %2938 = vmatmul.mubr.msk.f32.gmra.mxu0 %vm1020_vm1, %v3104_v3  ;;  %v843_v40 = vpop.permute.xlu1 %842 }
 0x123   : > { %vm957_vm2 = vcmp.eq.s32.totalorder %v3277_v59, %v843_v40  ;;  %v523_v41 = vpop.permute.xlu0 %522 }
 0x124   : > { %vm637_vm3 = vcmp.eq.s32.totalorder %v3277_v59, %v523_v41 }
 0x125   : > { %vm1021_vm4 = vmor %vm637_vm3, %vm957_vm2 }
 0x126   : > { %2940 = vmatprep.mubr.msk.f32.mxu0 %vm1021_vm4, %v3104_v3  ;;  %v846_v42 = vpop.permute.xlu1 %845 }
 0x127   : > { %vm958_vm5 = vcmp.eq.s32.totalorder %v3277_v59, %v846_v42  ;;  %v526_v43 = vpop.permute.xlu0 %525 }
 0x128   : > { %vm638_vm6 = vcmp.eq.s32.totalorder %v3277_v59, %v526_v43 }
 0x129   : > { %vm1022_vm7 = vmor %vm638_vm6, %vm958_vm5 }
 0x12a   : > { %2941 = vmatmul.mubr.msk.f32.gmra.mxu0 %vm1022_vm7, %v3104_v3  ;;  %v849_v44 = vpop.permute.xlu1 %848 }
 0x12b   : > { %vm959_vm8 = vcmp.eq.s32.totalorder %v3277_v59, %v849_v44  ;;  %v529_v45 = vpop.permute.xlu0 %528 }
 0x12c   : > { %vm639_vm9 = vcmp.eq.s32.totalorder %v3277_v59, %v529_v45 }
 0x12d   : > { %vm1023_vm10 = vmor %vm639_vm9, %vm959_vm8 }
 0x12e   : > { %2943 = vmatprep.mubr.msk.f32.mxu0 %vm1023_vm10, %v3104_v3  ;;  %v852_v46 = vpop.permute.xlu1 %851 }
 0x12f   : > { %vm960_vm11 = vcmp.eq.s32.totalorder %v3277_v59, %v852_v46  ;;  %v532_v47 = vpop.permute.xlu0 %531 }
 0x130   : > { %vm640_vm12 = vcmp.eq.s32.totalorder %v3277_v59, %v532_v47 }
 0x131   : > { %vm1024_vm13 = vmor %vm640_vm12, %vm960_vm11 }
 0x132   : > { %2944 = vmatmul.mubr.msk.f32.gmra.mxu0 %vm1024_vm13, %v3104_v3  ;;  %v855_v48 = vpop.permute.xlu1 %854 }
 0x133   : > { %vm961_vm14 = vcmp.eq.s32.totalorder %v3277_v59, %v855_v48  ;;  %v535_v49 = vpop.permute.xlu0 %534 }
 0x134   : > { %vm641_vm15 = vcmp.eq.s32.totalorder %v3277_v59, %v535_v49 }
 0x135   : > { %vm1025_vm0 = vmor %vm641_vm15, %vm961_vm14 }
 0x136   : > { %2946 = vmatprep.mubr.msk.f32.mxu0 %vm1025_vm0, %v3104_v3  ;;  %v858_v50 = vpop.permute.xlu1 %857 }
 0x137   : > { %vm962_vm1 = vcmp.eq.s32.totalorder %v3277_v59, %v858_v50  ;;  %v538_v51 = vpop.permute.xlu0 %537 }
 0x138   : > { %vm642_vm2 = vcmp.eq.s32.totalorder %v3277_v59, %v538_v51 }
 0x139   : > { %vm1026_vm3 = vmor %vm642_vm2, %vm962_vm1 }
 0x13a   : > { %2947 = vmatmul.mubr.msk.f32.gmra.mxu0 %vm1026_vm3, %v3104_v3  ;;  %v861_v52 = vpop.permute.xlu1 %860 }
 0x13b   : > { %vm963_vm4 = vcmp.eq.s32.totalorder %v3277_v59, %v861_v52  ;;  %v541_v53 = vpop.permute.xlu0 %540 }
 0x13c   : > { %vm643_vm5 = vcmp.eq.s32.totalorder %v3277_v59, %v541_v53 }
 0x13d   : > { %vm1027_vm6 = vmor %vm643_vm5, %vm963_vm4 }
 0x13e   : > { %2949 = vmatprep.mubr.msk.f32.mxu0 %vm1027_vm6, %v3104_v3  ;;  %v864_v54 = vpop.permute.xlu1 %863 }
 0x13f   : > { %vm964_vm7 = vcmp.eq.s32.totalorder %v3277_v59, %v864_v54  ;;  %v544_v55 = vpop.permute.xlu0 %543 }
 0x140   : > { %vm644_vm8 = vcmp.eq.s32.totalorder %v3277_v59, %v544_v55 }
 0x141   : > { %vm1028_vm9 = vmor %vm644_vm8, %vm964_vm7 }
 0x142   : > { %2950 = vmatmul.mubr.msk.f32.gmra.mxu0 %vm1028_vm9, %v3104_v3  ;;  %v867_v56 = vpop.permute.xlu1 %866 }
 0x143   : > { %vm965_vm10 = vcmp.eq.s32.totalorder %v3277_v59, %v867_v56  ;;  %v547_v57 = vpop.permute.xlu0 %546 }
 0x144   : > { %vm645_vm11 = vcmp.eq.s32.totalorder %v3277_v59, %v547_v57 }
 0x145   : > { %vm1029_vm12 = vmor %vm645_vm11, %vm965_vm10 }
 0x146   : > { %2952 = vmatprep.mubr.msk.f32.mxu0 %vm1029_vm12, %v3104_v3  ;;  %v870_v58 = vpop.permute.xlu1 %869 }
 0x147   : > { %vm966_vm13 = vcmp.eq.s32.totalorder %v3277_v59, %v870_v58  ;;  %v550_v60 = vpop.permute.xlu0 %549 }
 0x148   : > { %vm646_vm14 = vcmp.eq.s32.totalorder %v3277_v59, %v550_v60 }
 0x149   : > { %vm1030_vm15 = vmor %vm646_vm14, %vm966_vm13  ;;  %vm1786_vm14 = vcmask 261120  }
 0x14a   : > { %2953 = vmatmul.mubr.msk.f32.gmra.mxu0 %vm1030_vm15, %v3104_v3  ;;  %v873_v61 = vpop.permute.xlu1 %872 }
 0x14b   : > { %vm967_vm0 = vcmp.eq.s32.totalorder %v3277_v59, %v873_v61  ;;  %v553_v62 = vpop.permute.xlu0 %552 }
 0x14c   : > { %vm647_vm1 = vcmp.eq.s32.totalorder %v3277_v59, %v553_v62 }
 0x14d   : > { %vm1031_vm2 = vmor %vm647_vm1, %vm967_vm0 }
 0x14e   : > { %2955 = vmatprep.mubr.msk.f32.mxu0 %vm1031_vm2, %v3104_v3  ;;  %v876_v63 = vpop.permute.xlu1 %875 }
 0x14f   : > { %vm968_vm3 = vcmp.eq.s32.totalorder %v3277_v59, %v876_v63  ;;  %v556_v0 = vpop.permute.xlu0 %555 }
 0x150   : > { %vm648_vm4 = vcmp.eq.s32.totalorder %v3277_v59, %v556_v0 }
 0x151   : > { %vm1032_vm5 = vmor %vm648_vm4, %vm968_vm3 }
 0x152   : > { %2956 = vmatmul.mubr.msk.f32.gmra.mxu0 %vm1032_vm5, %v3104_v3  ;;  %v879_v1 = vpop.permute.xlu1 %878 }
 0x153   : > { %vm969_vm6 = vcmp.eq.s32.totalorder %v3277_v59, %v879_v1  ;;  %v559_v2 = vpop.permute.xlu0 %558 }
 0x154   : > { %vm649_vm7 = vcmp.eq.s32.totalorder %v3277_v59, %v559_v2 }
 0x155   : > { %vm1033_vm8 = vmor %vm649_vm7, %vm969_vm6 }
 0x156   : > { %2958 = vmatprep.mubr.msk.f32.mxu0 %vm1033_vm8, %v3104_v3  ;;  %v882_v5 = vpop.permute.xlu1 %881 }
 0x157   : > { %vm970_vm9 = vcmp.eq.s32.totalorder %v3277_v59, %v882_v5  ;;  %v2885_v6 = vpop.f32.mrf.mxu0  ;;  %v562_v7 = vpop.permute.xlu0 %561 }
 0x158   : > { %v1270_v8 = vadd.f32 %v2885_v6, %v3507_v4  ;;  %vm650_vm10 = vcmp.eq.s32.totalorder %v3277_v59, %v562_v7 }
 0x159   : > { %vm1034_vm11 = vmor %vm650_vm10, %vm970_vm9  ;;  %v1264_v9 = vpop.f32.mrf.mxu0 }
 0x15a   : > { %v1265_v10 = vadd.f32 %v3507_v4, %v1264_v9  ;;  %2959 = vmatmul.mubr.msk.f32.gmra.mxu0 %vm1034_vm11, %v3104_v3  ;;  %v885_v11 = vpop.permute.xlu1 %884  ;;  %vm1584_vm12 = vcmp.gt.f32.partialorder %v1270_v8, 0.0  ;;  %v1648_v12 = vmul.f32 0.01, %v1270_v8 }
 0x15b   : > { %vm971_vm13 = vcmp.eq.s32.totalorder %v3277_v59, %v885_v11  ;;  %v2888_v13 = vpop.f32.mrf.mxu0  ;;  %v565_v14 = vpop.permute.xlu0 %564 }
 0x15c   : > { %v1280_v15 = vadd.f32 %v2888_v13, %v3507_v4  ;;  %vm651_vm15 = vcmp.eq.s32.totalorder %v3277_v59, %v565_v14  ;;  %vm1583_vm0 = vcmp.gt.f32.partialorder %v1265_v10, 0.0  ;;  %v1647_v16 = vmul.f32 0.01, %v1265_v10 }
 0x15d   : > { %vm1035_vm1 = vmor %vm651_vm15, %vm971_vm13  ;;  %v1274_v17 = vpop.f32.mrf.mxu0  ;;  %v1712_v23 = vsel %vm1584_vm12, %v1270_v8, %v1648_v12 }
 0x15e   : > { %v1275_v18 = vadd.f32 %v3507_v4, %v1274_v17  ;;  %2961 = vmatprep.mubr.msk.f32.mxu0 %vm1035_vm1, %v3104_v3  ;;  %v888_v19 = vpop.permute.xlu1 %887  ;;  %v1711_v20 = vsel %vm1583_vm0, %v1265_v10, %v1647_v16  ;;  %v1650_v21 = vmul.f32 0.01, %v1280_v15  ;;  %vm1586_vm3 = vcmp.gt.f32.partialorder %v1280_v15, 0.0 }
 0x15f   : > { %vm972_vm2 = vcmp.eq.s32.totalorder %v3277_v59, %v888_v19  ;;  %2987 = vmatprep.mubr.msk.f32.mxu1 %vm1786_vm14, %v1711_v20  ;;  %v568_v22 = vpop.permute.xlu0 %567 }
 0x160   : > { %vm1585_vm4 = vcmp.gt.f32.partialorder %v1275_v18, 0.0  ;;  %v1649_v24 = vmul.f32 0.01, %v1275_v18  ;;  %vm652_vm5 = vcmp.eq.s32.totalorder %v3277_v59, %v568_v22  ;;  %2988 = vmatmul.mubr.msk.f32.vlgmr.msra.gmra.mxu1 %vm1786_vm14, %v1712_v23  ;;  %v1714_v31 = vsel %vm1586_vm3, %v1280_v15, %v1650_v21 }
 0x161   : > { %vm1036_vm6 = vmor %vm652_vm5, %vm972_vm2 }
 0x162   : > { %v2891_v25 = vpop.f32.mrf.mxu0  ;;  %2962 = vmatmul.mubr.msk.f32.gmra.mxu0 %vm1036_vm6, %v3104_v3  ;;  %v891_v27 = vpop.permute.xlu1 %890  ;;  %v1713_v28 = vsel %vm1585_vm4, %v1275_v18, %v1649_v24 }
 0x163   : > { %v1290_v26 = vadd.f32 %v2891_v25, %v3507_v4  ;;  %vm973_vm7 = vcmp.eq.s32.totalorder %v3277_v59, %v891_v27  ;;  %2990 = vmatprep.mubr.msk.f32.mxu1 %vm1786_vm14, %v1713_v28  ;;  %v571_v29 = vpop.permute.xlu0 %570 }
 0x164   : > { %v1284_v30 = vpop.f32.mrf.mxu0  ;;  %vm653_vm8 = vcmp.eq.s32.totalorder %v3277_v59, %v571_v29  ;;  %2991 = vmatmul.mubr.msk.f32.gmra.mxu1 %vm1786_vm14, %v1714_v31 }
 0x165   : > { %v1285_v32 = vadd.f32 %v3507_v4, %v1284_v30  ;;  %v1652_v33 = vmul.f32 0.01, %v1290_v26  ;;  %vm1037_vm9 = vmor %vm653_vm8, %vm973_vm7  ;;  %vm1588_vm10 = vcmp.gt.f32.partialorder %v1290_v26, 0.0 }
 0x166   : > { %2964 = vmatprep.mubr.msk.f32.mxu0 %vm1037_vm9, %v3104_v3  ;;  %v894_v35 = vpop.permute.xlu1 %893 }
 0x167   : > { %vm1587_vm11 = vcmp.gt.f32.partialorder %v1285_v32, 0.0  ;;  %v1651_v34 = vmul.f32 0.01, %v1285_v32  ;;  %vm974_vm12 = vcmp.eq.s32.totalorder %v3277_v59, %v894_v35  ;;  %v574_v36 = vpop.permute.xlu0 %573  ;;  %v1716_v39 = vsel %vm1588_vm10, %v1290_v26, %v1652_v33 }
 0x168   : > { %vm654_vm13 = vcmp.eq.s32.totalorder %v3277_v59, %v574_v36 }
 0x169   : > { %v1715_v37 = vsel %vm1587_vm11, %v1285_v32, %v1651_v34  ;;  %vm1038_vm15 = vmor %vm654_vm13, %vm974_vm12 }
 0x16a   : > { %v2894_v38 = vpop.f32.mrf.mxu0  ;;  %2993 = vmatprep.mubr.msk.f32.mxu1 %vm1786_vm14, %v1715_v37  ;;  %2965 = vmatmul.mubr.msk.f32.gmra.mxu0 %vm1038_vm15, %v3104_v3  ;;  %v897_v41 = vpop.permute.xlu1 %896 }
 0x16b   : > { %v1300_v40 = vadd.f32 %v2894_v38, %v3507_v4  ;;  %2994 = vmatmul.mubr.msk.f32.gmra.mxu1 %vm1786_vm14, %v1716_v39  ;;  %vm975_vm0 = vcmp.eq.s32.totalorder %v3277_v59, %v897_v41  ;;  %v577_v42 = vpop.permute.xlu0 %576 }
 0x16c   : > { %v1294_v43 = vpop.f32.mrf.mxu0  ;;  %vm655_vm1 = vcmp.eq.s32.totalorder %v3277_v59, %v577_v42 }
 0x16d   : > { %v1295_v44 = vadd.f32 %v3507_v4, %v1294_v43  ;;  %v1654_v45 = vmul.f32 0.01, %v1300_v40  ;;  %vm1039_vm2 = vmor %vm655_vm1, %vm975_vm0  ;;  %vm1590_vm3 = vcmp.gt.f32.partialorder %v1300_v40, 0.0 }
 0x16e   : > { %2967 = vmatprep.mubr.msk.f32.mxu0 %vm1039_vm2, %v3104_v3  ;;  %v900_v47 = vpop.permute.xlu1 %899 }
 0x16f   : > { %vm1589_vm4 = vcmp.gt.f32.partialorder %v1295_v44, 0.0  ;;  %v1653_v46 = vmul.f32 0.01, %v1295_v44  ;;  %vm976_vm5 = vcmp.eq.s32.totalorder %v3277_v59, %v900_v47  ;;  %v580_v48 = vpop.permute.xlu0 %579  ;;  %v1718_v51 = vsel %vm1590_vm3, %v1300_v40, %v1654_v45 }
 0x170   : > { %vm656_vm6 = vcmp.eq.s32.totalorder %v3277_v59, %v580_v48 }
 0x171   : > { %v1717_v49 = vsel %vm1589_vm4, %v1295_v44, %v1653_v46  ;;  %vm1040_vm7 = vmor %vm656_vm6, %vm976_vm5 }
 0x172   : > { %v2897_v50 = vpop.f32.mrf.mxu0  ;;  %2996 = vmatprep.mubr.msk.f32.mxu1 %vm1786_vm14, %v1717_v49  ;;  %2968 = vmatmul.mubr.msk.f32.gmra.mxu0 %vm1040_vm7, %v3104_v3  ;;  %v903_v53 = vpop.permute.xlu1 %902 }
 0x173   : > { %v1310_v52 = vadd.f32 %v2897_v50, %v3507_v4  ;;  %2997 = vmatmul.mubr.msk.f32.gmra.mxu1 %vm1786_vm14, %v1718_v51  ;;  %vm977_vm8 = vcmp.eq.s32.totalorder %v3277_v59, %v903_v53  ;;  %v583_v54 = vpop.permute.xlu0 %582 }
 0x174   : > { %v1304_v55 = vpop.f32.mrf.mxu0  ;;  %vm657_vm9 = vcmp.eq.s32.totalorder %v3277_v59, %v583_v54 }
 0x175   : > { %v1305_v56 = vadd.f32 %v3507_v4, %v1304_v55  ;;  %v1656_v57 = vmul.f32 0.01, %v1310_v52  ;;  %vm1041_vm10 = vmor %vm657_vm9, %vm977_vm8  ;;  %vm1592_vm11 = vcmp.gt.f32.partialorder %v1310_v52, 0.0 }
 0x176   : > { %2970 = vmatprep.mubr.msk.f32.mxu0 %vm1041_vm10, %v3104_v3  ;;  %v906_v60 = vpop.permute.xlu1 %905 }
 0x177   : > { %vm1591_vm12 = vcmp.gt.f32.partialorder %v1305_v56, 0.0  ;;  %v1655_v58 = vmul.f32 0.01, %v1305_v56  ;;  %vm978_vm13 = vcmp.eq.s32.totalorder %v3277_v59, %v906_v60  ;;  %v586_v61 = vpop.permute.xlu0 %585  ;;  %v1720_v0 = vsel %vm1592_vm11, %v1310_v52, %v1656_v57 }
 0x178   : > { %vm658_vm15 = vcmp.eq.s32.totalorder %v3277_v59, %v586_v61 }
 0x179   : > { %v1719_v62 = vsel %vm1591_vm12, %v1305_v56, %v1655_v58  ;;  %vm1042_vm0 = vmor %vm658_vm15, %vm978_vm13 }
 0x17a   : > { %v2900_v63 = vpop.f32.mrf.mxu0  ;;  %2999 = vmatprep.mubr.msk.f32.mxu1 %vm1786_vm14, %v1719_v62  ;;  %2971 = vmatmul.mubr.msk.f32.gmra.mxu0 %vm1042_vm0, %v3104_v3  ;;  %v909_v2 = vpop.permute.xlu1 %908 }
 0x17b   : > { %v1320_v1 = vadd.f32 %v2900_v63, %v3507_v4  ;;  %3000 = vmatmul.mubr.msk.f32.gmra.mxu1 %vm1786_vm14, %v1720_v0  ;;  %vm979_vm1 = vcmp.eq.s32.totalorder %v3277_v59, %v909_v2  ;;  %v589_v5 = vpop.permute.xlu0 %588 }
 0x17c   : > { %v1314_v6 = vpop.f32.mrf.mxu0  ;;  %vm659_vm2 = vcmp.eq.s32.totalorder %v3277_v59, %v589_v5 }
 0x17d   : > { %v1315_v7 = vadd.f32 %v3507_v4, %v1314_v6  ;;  %v1658_v8 = vmul.f32 0.01, %v1320_v1  ;;  %vm1043_vm3 = vmor %vm659_vm2, %vm979_vm1  ;;  %vm1594_vm4 = vcmp.gt.f32.partialorder %v1320_v1, 0.0 }
 0x17e   : > { %2973 = vmatprep.mubr.msk.f32.mxu0 %vm1043_vm3, %v3104_v3  ;;  %v912_v10 = vpop.permute.xlu1 %911 }
 0x17f   : > { %vm1593_vm5 = vcmp.gt.f32.partialorder %v1315_v7, 0.0  ;;  %v1657_v9 = vmul.f32 0.01, %v1315_v7  ;;  %vm980_vm6 = vcmp.eq.s32.totalorder %v3277_v59, %v912_v10  ;;  %v592_v11 = vpop.permute.xlu0 %591  ;;  %v1722_v14 = vsel %vm1594_vm4, %v1320_v1, %v1658_v8 }
 0x180   : > { %vm660_vm7 = vcmp.eq.s32.totalorder %v3277_v59, %v592_v11 }
 0x181   : > { %v1721_v12 = vsel %vm1593_vm5, %v1315_v7, %v1657_v9  ;;  %vm1044_vm8 = vmor %vm660_vm7, %vm980_vm6 }
 0x182   : > { %v2903_v13 = vpop.f32.mrf.mxu0  ;;  %3002 = vmatprep.mubr.msk.f32.mxu1 %vm1786_vm14, %v1721_v12  ;;  %2974 = vmatmul.mubr.msk.f32.gmra.mxu0 %vm1044_vm8, %v3104_v3  ;;  %v915_v16 = vpop.permute.xlu1 %914 }
 0x183   : > { %v1330_v15 = vadd.f32 %v2903_v13, %v3507_v4  ;;  %3003 = vmatmul.mubr.msk.f32.gmra.mxu1 %vm1786_vm14, %v1722_v14  ;;  %vm981_vm9 = vcmp.eq.s32.totalorder %v3277_v59, %v915_v16  ;;  %v595_v17 = vpop.permute.xlu0 %594 }
 0x184   : > { %v1324_v18 = vpop.f32.mrf.mxu0  ;;  %vm661_vm10 = vcmp.eq.s32.totalorder %v3277_v59, %v595_v17 }
 0x185   : > { %v1325_v19 = vadd.f32 %v3507_v4, %v1324_v18  ;;  %v1660_v20 = vmul.f32 0.01, %v1330_v15  ;;  %vm1045_vm11 = vmor %vm661_vm10, %vm981_vm9  ;;  %vm1596_vm12 = vcmp.gt.f32.partialorder %v1330_v15, 0.0 }
 0x186   : > { %2976 = vmatprep.mubr.msk.f32.mxu0 %vm1045_vm11, %v3104_v3  ;;  %v918_v22 = vpop.permute.xlu1 %917 }
 0x187   : > { %vm1595_vm13 = vcmp.gt.f32.partialorder %v1325_v19, 0.0  ;;  %v1659_v21 = vmul.f32 0.01, %v1325_v19  ;;  %vm982_vm15 = vcmp.eq.s32.totalorder %v3277_v59, %v918_v22  ;;  %v598_v23 = vpop.permute.xlu0 %597  ;;  %v1724_v26 = vsel %vm1596_vm12, %v1330_v15, %v1660_v20 }
 0x188   : > { %vm662_vm0 = vcmp.eq.s32.totalorder %v3277_v59, %v598_v23 }
 0x189   : > { %v1723_v24 = vsel %vm1595_vm13, %v1325_v19, %v1659_v21  ;;  %vm1046_vm1 = vmor %vm662_vm0, %vm982_vm15 }
 0x18a   : > { %v2906_v25 = vpop.f32.mrf.mxu0  ;;  %3005 = vmatprep.mubr.msk.f32.mxu1 %vm1786_vm14, %v1723_v24  ;;  %2977 = vmatmul.mubr.msk.f32.gmra.mxu0 %vm1046_vm1, %v3104_v3 }
 0x18b   : > { %v1340_v27 = vadd.f32 %v2906_v25, %v3507_v4  ;;  %3006 = vmatmul.mubr.msk.f32.gmra.mxu1 %vm1786_vm14, %v1724_v26 }
 0x18c   : > { %v1334_v28 = vpop.f32.mrf.mxu0 }
 0x18d   : > { %v1335_v29 = vadd.f32 %v3507_v4, %v1334_v28  ;;  %v1662_v30 = vmul.f32 0.01, %v1340_v27  ;;  %vm1598_vm2 = vcmp.gt.f32.partialorder %v1340_v27, 0.0 }
 0x18f   : > { %vm1597_vm3 = vcmp.gt.f32.partialorder %v1335_v29, 0.0  ;;  %v1661_v31 = vmul.f32 0.01, %v1335_v29  ;;  %v1726_v33 = vsel %vm1598_vm2, %v1340_v27, %v1662_v30 }
 0x191   : > { %v1725_v59 = vsel %vm1597_vm3, %v1335_v29, %v1661_v31 }
 0x192   : > { %v2909_v32 = vpop.f32.mrf.mxu0  ;;  %3008 = vmatprep.mubr.msk.f32.mxu1 %vm1786_vm14, %v1725_v59 }
 0x193   : > { %v1350_v34 = vadd.f32 %v2909_v32, %v3507_v4  ;;  %3009 = vmatmul.mubr.msk.f32.gmra.mxu1 %vm1786_vm14, %v1726_v33 }
 0x194   : > { %v1344_v35 = vpop.f32.mrf.mxu0 }
 0x195   : > { %v1345_v3 = vadd.f32 %v3507_v4, %v1344_v35  ;;  %v1664_v36 = vmul.f32 0.01, %v1350_v34  ;;  %vm1600_vm4 = vcmp.gt.f32.partialorder %v1350_v34, 0.0 }
 0x197   : > { %vm1599_vm5 = vcmp.gt.f32.partialorder %v1345_v3, 0.0  ;;  %v1663_v37 = vmul.f32 0.01, %v1345_v3  ;;  %v1728_v40 = vsel %vm1600_vm4, %v1350_v34, %v1664_v36 }
 0x199   : > { %v1727_v38 = vsel %vm1599_vm5, %v1345_v3, %v1663_v37 }
 0x19a   : > { %v2912_v39 = vpop.f32.mrf.mxu0  ;;  %3011 = vmatprep.mubr.msk.f32.mxu1 %vm1786_vm14, %v1727_v38 }
 0x19b   : > { %v1360_v41 = vadd.f32 %v2912_v39, %v3507_v4  ;;  %3012 = vmatmul.mubr.msk.f32.gmra.mxu1 %vm1786_vm14, %v1728_v40 }
 0x19c   : > { %v1354_v42 = vpop.f32.mrf.mxu0 }
 0x19d   : > { %v1355_v43 = vadd.f32 %v3507_v4, %v1354_v42  ;;  %v1666_v44 = vmul.f32 0.01, %v1360_v41  ;;  %vm1602_vm6 = vcmp.gt.f32.partialorder %v1360_v41, 0.0 }
 0x19f   : > { %vm1601_vm7 = vcmp.gt.f32.partialorder %v1355_v43, 0.0  ;;  %v1665_v45 = vmul.f32 0.01, %v1355_v43  ;;  %v1730_v48 = vsel %vm1602_vm6, %v1360_v41, %v1666_v44 }
 0x1a1   : > { %v1729_v46 = vsel %vm1601_vm7, %v1355_v43, %v1665_v45 }
 0x1a2   : > { %v2915_v47 = vpop.f32.mrf.mxu0  ;;  %3014 = vmatprep.mubr.msk.f32.mxu1 %vm1786_vm14, %v1729_v46 }
 0x1a3   : > { %v1370_v49 = vadd.f32 %v2915_v47, %v3507_v4  ;;  %3015 = vmatmul.mubr.msk.f32.gmra.mxu1 %vm1786_vm14, %v1730_v48 }
 0x1a4   : > { %v1364_v50 = vpop.f32.mrf.mxu0 }
 0x1a5   : > { %v1365_v51 = vadd.f32 %v3507_v4, %v1364_v50  ;;  %v1668_v52 = vmul.f32 0.01, %v1370_v49  ;;  %vm1604_vm8 = vcmp.gt.f32.partialorder %v1370_v49, 0.0 }
 0x1a7   : > { %vm1603_vm9 = vcmp.gt.f32.partialorder %v1365_v51, 0.0  ;;  %v1667_v53 = vmul.f32 0.01, %v1365_v51  ;;  %v1732_v56 = vsel %vm1604_vm8, %v1370_v49, %v1668_v52 }
 0x1a9   : > { %v1731_v54 = vsel %vm1603_vm9, %v1365_v51, %v1667_v53 }
 0x1aa   : > { %v2918_v55 = vpop.f32.mrf.mxu0  ;;  %3017 = vmatprep.mubr.msk.f32.mxu1 %vm1786_vm14, %v1731_v54 }
 0x1ab   : > { %v1380_v57 = vadd.f32 %v2918_v55, %v3507_v4  ;;  %3018 = vmatmul.mubr.msk.f32.gmra.mxu1 %vm1786_vm14, %v1732_v56 }
 0x1ac   : > { %v1374_v58 = vpop.f32.mrf.mxu0 }
 0x1ad   : > { %v1375_v60 = vadd.f32 %v3507_v4, %v1374_v58  ;;  %v1670_v61 = vmul.f32 0.01, %v1380_v57  ;;  %vm1606_vm10 = vcmp.gt.f32.partialorder %v1380_v57, 0.0 }
 0x1af   : > { %vm1605_vm11 = vcmp.gt.f32.partialorder %v1375_v60, 0.0  ;;  %v1669_v62 = vmul.f32 0.01, %v1375_v60  ;;  %v1734_v1 = vsel %vm1606_vm10, %v1380_v57, %v1670_v61 }
 0x1b1   : > { %v1733_v63 = vsel %vm1605_vm11, %v1375_v60, %v1669_v62 }
 0x1b2   : > { %v2921_v0 = vpop.f32.mrf.mxu0  ;;  %3020 = vmatprep.mubr.msk.f32.mxu1 %vm1786_vm14, %v1733_v63 }
 0x1b3   : > { %v1390_v2 = vadd.f32 %v2921_v0, %v3507_v4  ;;  %3021 = vmatmul.mubr.msk.f32.gmra.mxu1 %vm1786_vm14, %v1734_v1 }
 0x1b4   : > { %v1384_v5 = vpop.f32.mrf.mxu0 }
 0x1b5   : > { %v1385_v6 = vadd.f32 %v3507_v4, %v1384_v5  ;;  %v1672_v7 = vmul.f32 0.01, %v1390_v2  ;;  %vm1608_vm12 = vcmp.gt.f32.partialorder %v1390_v2, 0.0 }
 0x1b7   : > { %vm1607_vm13 = vcmp.gt.f32.partialorder %v1385_v6, 0.0  ;;  %v1671_v8 = vmul.f32 0.01, %v1385_v6  ;;  %v1736_v11 = vsel %vm1608_vm12, %v1390_v2, %v1672_v7 }
 0x1b9   : > { %v1735_v9 = vsel %vm1607_vm13, %v1385_v6, %v1671_v8 }
 0x1ba   : > { %v2924_v10 = vpop.f32.mrf.mxu0  ;;  %3023 = vmatprep.mubr.msk.f32.mxu1 %vm1786_vm14, %v1735_v9 }
 0x1bb   : > { %v1400_v12 = vadd.f32 %v2924_v10, %v3507_v4  ;;  %3024 = vmatmul.mubr.msk.f32.gmra.mxu1 %vm1786_vm14, %v1736_v11 }
 0x1bc   : > { %v1394_v13 = vpop.f32.mrf.mxu0 }
 0x1bd   : > { %v1395_v14 = vadd.f32 %v3507_v4, %v1394_v13  ;;  %v1674_v15 = vmul.f32 0.01, %v1400_v12  ;;  %vm1610_vm15 = vcmp.gt.f32.partialorder %v1400_v12, 0.0 }
 0x1bf   : > { %vm1609_vm0 = vcmp.gt.f32.partialorder %v1395_v14, 0.0  ;;  %v1673_v16 = vmul.f32 0.01, %v1395_v14  ;;  %v1738_v19 = vsel %vm1610_vm15, %v1400_v12, %v1674_v15 }
 0x1c1   : > { %v1737_v17 = vsel %vm1609_vm0, %v1395_v14, %v1673_v16 }
 0x1c2   : > { %v2927_v18 = vpop.f32.mrf.mxu0  ;;  %3026 = vmatprep.mubr.msk.f32.mxu1 %vm1786_vm14, %v1737_v17 }
 0x1c3   : > { %v1410_v20 = vadd.f32 %v2927_v18, %v3507_v4  ;;  %3027 = vmatmul.mubr.msk.f32.gmra.mxu1 %vm1786_vm14, %v1738_v19 }
 0x1c4   : > { %v1404_v21 = vpop.f32.mrf.mxu0 }
 0x1c5   : > { %v1405_v22 = vadd.f32 %v3507_v4, %v1404_v21  ;;  %v1676_v23 = vmul.f32 0.01, %v1410_v20  ;;  %vm1612_vm1 = vcmp.gt.f32.partialorder %v1410_v20, 0.0 }
 0x1c7   : > { %vm1611_vm2 = vcmp.gt.f32.partialorder %v1405_v22, 0.0  ;;  %v1675_v24 = vmul.f32 0.01, %v1405_v22  ;;  %v1740_v27 = vsel %vm1612_vm1, %v1410_v20, %v1676_v23 }
 0x1c9   : > { %v1739_v25 = vsel %vm1611_vm2, %v1405_v22, %v1675_v24 }
 0x1ca   : > { %v2930_v26 = vpop.f32.mrf.mxu0  ;;  %3029 = vmatprep.mubr.msk.f32.mxu1 %vm1786_vm14, %v1739_v25 }
 0x1cb   : > { %v1420_v28 = vadd.f32 %v2930_v26, %v3507_v4  ;;  %3030 = vmatmul.mubr.msk.f32.gmra.mxu1 %vm1786_vm14, %v1740_v27 }
 0x1cc   : > { %v1414_v29 = vpop.f32.mrf.mxu0 }
 0x1cd   : > { %v1415_v30 = vadd.f32 %v3507_v4, %v1414_v29  ;;  %v1678_v31 = vmul.f32 0.01, %v1420_v28  ;;  %vm1614_vm3 = vcmp.gt.f32.partialorder %v1420_v28, 0.0 }
 0x1cf   : > { %vm1613_vm4 = vcmp.gt.f32.partialorder %v1415_v30, 0.0  ;;  %v1677_v59 = vmul.f32 0.01, %v1415_v30  ;;  %v1742_v34 = vsel %vm1614_vm3, %v1420_v28, %v1678_v31 }
 0x1d1   : > { %v1741_v32 = vsel %vm1613_vm4, %v1415_v30, %v1677_v59 }
 0x1d2   : > { %v2933_v33 = vpop.f32.mrf.mxu0  ;;  %3032 = vmatprep.mubr.msk.f32.mxu1 %vm1786_vm14, %v1741_v32 }
 0x1d3   : > { %v1430_v35 = vadd.f32 %v2933_v33, %v3507_v4  ;;  %3033 = vmatmul.mubr.msk.f32.gmra.mxu1 %vm1786_vm14, %v1742_v34 }
 0x1d4   : > { %v1424_v3 = vpop.f32.mrf.mxu0 }
 0x1d5   : > { %v1425_v36 = vadd.f32 %v3507_v4, %v1424_v3  ;;  %v1680_v37 = vmul.f32 0.01, %v1430_v35  ;;  %vm1616_vm5 = vcmp.gt.f32.partialorder %v1430_v35, 0.0 }
 0x1d7   : > { %vm1615_vm6 = vcmp.gt.f32.partialorder %v1425_v36, 0.0  ;;  %v1679_v38 = vmul.f32 0.01, %v1425_v36  ;;  %v1744_v40 = vsel %vm1616_vm5, %v1430_v35, %v1680_v37 }
 0x1d9   : > { %v1743_v39 = vsel %vm1615_vm6, %v1425_v36, %v1679_v38 }
 0x1da   : > { %3035 = vmatprep.mubr.msk.f32.mxu1 %vm1786_vm14, %v1743_v39  ;;  %v2936_v41 = vpop.f32.mrf.mxu0 }
 0x1db   : > { %3036 = vmatmul.mubr.msk.f32.gmra.mxu1 %vm1786_vm14, %v1744_v40  ;;  %v1440_v42 = vadd.f32 %v2936_v41, %v3507_v4 }
 0x1dc   : > { %v1434_v43 = vpop.f32.mrf.mxu0 }
 0x1dd   : > { %v1435_v44 = vadd.f32 %v3507_v4, %v1434_v43  ;;  %v1682_v45 = vmul.f32 0.01, %v1440_v42  ;;  %vm1618_vm7 = vcmp.gt.f32.partialorder %v1440_v42, 0.0 }
 0x1df   : > { %vm1617_vm8 = vcmp.gt.f32.partialorder %v1435_v44, 0.0  ;;  %v1681_v46 = vmul.f32 0.01, %v1435_v44  ;;  %v1746_v49 = vsel %vm1618_vm7, %v1440_v42, %v1682_v45 }
 0x1e1   : > { %v1745_v47 = vsel %vm1617_vm8, %v1435_v44, %v1681_v46 }
 0x1e2   : > { %v2939_v48 = vpop.f32.mrf.mxu0  ;;  %3038 = vmatprep.mubr.msk.f32.mxu1 %vm1786_vm14, %v1745_v47  ;;  %v3655_v47 = vld [vmem:[%s3825_s5] ss:$0 sm:$0xff] }
 0x1e3   : > { %v1450_v50 = vadd.f32 %v2939_v48, %v3507_v4  ;;  %3039 = vmatmul.mubr.msk.f32.gmra.mxu1 %vm1786_vm14, %v1746_v49 }
 0x1e4   : > { %v1444_v51 = vpop.f32.mrf.mxu0 }
 0x1e5   : > { %v1445_v52 = vadd.f32 %v3507_v4, %v1444_v51  ;;  %v1684_v53 = vmul.f32 0.01, %v1450_v50  ;;  %vm1620_vm9 = vcmp.gt.f32.partialorder %v1450_v50, 0.0 }
 0x1e7   : > { %vm1619_vm10 = vcmp.gt.f32.partialorder %v1445_v52, 0.0  ;;  %v1683_v54 = vmul.f32 0.01, %v1445_v52  ;;  %v1748_v57 = vsel %vm1620_vm9, %v1450_v50, %v1684_v53 }
 0x1e9   : > { %v1747_v55 = vsel %vm1619_vm10, %v1445_v52, %v1683_v54 }
 0x1ea   : > { %v2942_v56 = vpop.f32.mrf.mxu0  ;;  %3041 = vmatprep.mubr.msk.f32.mxu1 %vm1786_vm14, %v1747_v55 }
 0x1eb   : > { %v1460_v58 = vadd.f32 %v2942_v56, %v3507_v4  ;;  %3042 = vmatmul.mubr.msk.f32.gmra.mxu1 %vm1786_vm14, %v1748_v57 }
 0x1ec   : > { %v1454_v60 = vpop.f32.mrf.mxu0 }
 0x1ed   : > { %v1455_v61 = vadd.f32 %v3507_v4, %v1454_v60  ;;  %v1686_v62 = vmul.f32 0.01, %v1460_v58  ;;  %vm1622_vm11 = vcmp.gt.f32.partialorder %v1460_v58, 0.0 }
 0x1ef   : > { %vm1621_vm12 = vcmp.gt.f32.partialorder %v1455_v61, 0.0  ;;  %v1685_v63 = vmul.f32 0.01, %v1455_v61  ;;  %v1750_v2 = vsel %vm1622_vm11, %v1460_v58, %v1686_v62 }
 0x1f1   : > { %v1749_v0 = vsel %vm1621_vm12, %v1455_v61, %v1685_v63 }
 0x1f2   : > { %v2945_v1 = vpop.f32.mrf.mxu0  ;;  %3044 = vmatprep.mubr.msk.f32.mxu1 %vm1786_vm14, %v1749_v0 }
 0x1f3   : > { %v1470_v5 = vadd.f32 %v2945_v1, %v3507_v4  ;;  %3045 = vmatmul.mubr.msk.f32.gmra.mxu1 %vm1786_vm14, %v1750_v2 }
 0x1f4   : > { %v1464_v6 = vpop.f32.mrf.mxu0 }
 0x1f5   : > { %v1465_v7 = vadd.f32 %v3507_v4, %v1464_v6  ;;  %v1688_v8 = vmul.f32 0.01, %v1470_v5  ;;  %vm1624_vm13 = vcmp.gt.f32.partialorder %v1470_v5, 0.0 }
 0x1f7   : > { %vm1623_vm15 = vcmp.gt.f32.partialorder %v1465_v7, 0.0  ;;  %v1687_v9 = vmul.f32 0.01, %v1465_v7  ;;  %v1752_v12 = vsel %vm1624_vm13, %v1470_v5, %v1688_v8 }
 0x1f9   : > { %v1751_v10 = vsel %vm1623_vm15, %v1465_v7, %v1687_v9 }
 0x1fa   : > { %v2948_v11 = vpop.f32.mrf.mxu0  ;;  %3047 = vmatprep.mubr.msk.f32.mxu1 %vm1786_vm14, %v1751_v10 }
 0x1fb   : > { %v1480_v13 = vadd.f32 %v2948_v11, %v3507_v4  ;;  %3048 = vmatmul.mubr.msk.f32.gmra.mxu1 %vm1786_vm14, %v1752_v12 }
 0x1fc   : > { %v1474_v14 = vpop.f32.mrf.mxu0 }
 0x1fd   : > { %v1475_v15 = vadd.f32 %v3507_v4, %v1474_v14  ;;  %v1690_v16 = vmul.f32 0.01, %v1480_v13  ;;  %vm1626_vm0 = vcmp.gt.f32.partialorder %v1480_v13, 0.0 }
 0x1ff   : > { %vm1625_vm1 = vcmp.gt.f32.partialorder %v1475_v15, 0.0  ;;  %v1689_v17 = vmul.f32 0.01, %v1475_v15  ;;  %v1754_v20 = vsel %vm1626_vm0, %v1480_v13, %v1690_v16 }
 0x201   : > { %v1753_v18 = vsel %vm1625_vm1, %v1475_v15, %v1689_v17 }
 0x202   : > { %v2951_v19 = vpop.f32.mrf.mxu0  ;;  %3050 = vmatprep.mubr.msk.f32.mxu1 %vm1786_vm14, %v1753_v18 }
 0x203   : > { %v1490_v21 = vadd.f32 %v2951_v19, %v3507_v4  ;;  %3051 = vmatmul.mubr.msk.f32.gmra.mxu1 %vm1786_vm14, %v1754_v20 }
 0x204   : > { %v1484_v22 = vpop.f32.mrf.mxu0 }
 0x205   : > { %v1485_v23 = vadd.f32 %v3507_v4, %v1484_v22  ;;  %v1692_v24 = vmul.f32 0.01, %v1490_v21  ;;  %vm1628_vm2 = vcmp.gt.f32.partialorder %v1490_v21, 0.0 }
 0x207   : > { %vm1627_vm3 = vcmp.gt.f32.partialorder %v1485_v23, 0.0  ;;  %v1691_v25 = vmul.f32 0.01, %v1485_v23  ;;  %v1756_v28 = vsel %vm1628_vm2, %v1490_v21, %v1692_v24 }
 0x209   : > { %v1755_v26 = vsel %vm1627_vm3, %v1485_v23, %v1691_v25 }
 0x20a   : > { %v2954_v27 = vpop.f32.mrf.mxu0  ;;  %3053 = vmatprep.mubr.msk.f32.mxu1 %vm1786_vm14, %v1755_v26 }
 0x20b   : > { %v1500_v29 = vadd.f32 %v2954_v27, %v3507_v4  ;;  %3054 = vmatmul.mubr.msk.f32.gmra.mxu1 %vm1786_vm14, %v1756_v28 }
 0x20c   : > { %v1494_v30 = vpop.f32.mrf.mxu0 }
 0x20d   : > { %v1495_v31 = vadd.f32 %v3507_v4, %v1494_v30  ;;  %v1694_v59 = vmul.f32 0.01, %v1500_v29  ;;  %vm1630_vm4 = vcmp.gt.f32.partialorder %v1500_v29, 0.0 }
 0x20f   : > { %vm1629_vm5 = vcmp.gt.f32.partialorder %v1495_v31, 0.0  ;;  %v1693_v32 = vmul.f32 0.01, %v1495_v31  ;;  %v1758_v35 = vsel %vm1630_vm4, %v1500_v29, %v1694_v59 }
 0x211   : > { %v1757_v33 = vsel %vm1629_vm5, %v1495_v31, %v1693_v32 }
 0x212   : > { %v2957_v34 = vpop.f32.mrf.mxu0  ;;  %3056 = vmatprep.mubr.msk.f32.mxu1 %vm1786_vm14, %v1757_v33 }
 0x213   : > { %v1510_v3 = vadd.f32 %v2957_v34, %v3507_v4  ;;  %3057 = vmatmul.mubr.msk.f32.gmra.mxu1 %vm1786_vm14, %v1758_v35 }
 0x214   : > { %v1504_v36 = vpop.f32.mrf.mxu0 }
 0x215   : > { %v1505_v37 = vadd.f32 %v3507_v4, %v1504_v36  ;;  %v1696_v38 = vmul.f32 0.01, %v1510_v3  ;;  %vm1632_vm6 = vcmp.gt.f32.partialorder %v1510_v3, 0.0 }
 0x217   : > { %vm1631_vm7 = vcmp.gt.f32.partialorder %v1505_v37, 0.0  ;;  %v1695_v39 = vmul.f32 0.01, %v1505_v37  ;;  %v1760_v42 = vsel %vm1632_vm6, %v1510_v3, %v1696_v38 }
 0x219   : > { %v1759_v40 = vsel %vm1631_vm7, %v1505_v37, %v1695_v39 }
 0x21a   : > { %v2960_v41 = vpop.f32.mrf.mxu0  ;;  %3059 = vmatprep.mubr.msk.f32.mxu1 %vm1786_vm14, %v1759_v40 }
 0x21b   : > { %v1520_v43 = vadd.f32 %v2960_v41, %v3507_v4  ;;  %3060 = vmatmul.mubr.msk.f32.gmra.mxu1 %vm1786_vm14, %v1760_v42 }
 0x21c   : > { %v1514_v44 = vpop.f32.mrf.mxu0 }
 0x21d   : > { %v1515_v45 = vadd.f32 %v3507_v4, %v1514_v44  ;;  %v1698_v46 = vmul.f32 0.01, %v1520_v43  ;;  %vm1634_vm8 = vcmp.gt.f32.partialorder %v1520_v43, 0.0 }
 0x21f   : > { %vm1633_vm9 = vcmp.gt.f32.partialorder %v1515_v45, 0.0  ;;  %v1697_v48 = vmul.f32 0.01, %v1515_v45  ;;  %v1762_v54 = vsel %vm1634_vm8, %v1520_v43, %v1698_v46 }
 0x220   : > { %v2989_v49 = vpop.f32.mrf.mxu1 }
 0x221   : > { %v2051_v50 = vadd.f32 %v2989_v49, %v3655_v47  ;;  %v1761_v51 = vsel %vm1633_vm9, %v1515_v45, %v1697_v48 }
 0x222   : > { %v2963_v52 = vpop.f32.mrf.mxu0  ;;  %v2045_v53 = vpop.f32.mrf.mxu1  ;;  %3062 = vmatprep.mubr.msk.f32.mxu1 %vm1786_vm14, %v1761_v51 }
 0x223   : > { %2365 = vst [vmem:[%s3661_s10 + $0x8] sm:$0xff] %v2051_v50  ;;  %v1530_v55 = vadd.f32 %v2963_v52, %v3507_v4  ;;  %v2046_v56 = vadd.f32 %v3655_v47, %v2045_v53  ;;  %3063 = vmatmul.mubr.msk.f32.gmra.mxu1 %vm1786_vm14, %v1762_v54 }
 0x224   : > { %v1524_v57 = vpop.f32.mrf.mxu0  ;;  %v2992_v58 = vpop.f32.mrf.mxu1 }
 0x225   : > { %2364 = vst [vmem:[%s3661_s10] sm:$0xff] %v2046_v56  ;;  %v1525_v60 = vadd.f32 %v3507_v4, %v1524_v57  ;;  %v2061_v61 = vadd.f32 %v2992_v58, %v3655_v47  ;;  %v1700_v62 = vmul.f32 0.01, %v1530_v55  ;;  %vm1636_vm10 = vcmp.gt.f32.partialorder %v1530_v55, 0.0 }
 0x226   : > { %v2055_v63 = vpop.f32.mrf.mxu1 }
 0x227   : > { %vm1635_vm11 = vcmp.gt.f32.partialorder %v1525_v60, 0.0  ;;  %v1699_v0 = vmul.f32 0.01, %v1525_v60  ;;  %2367 = vst [vmem:[%s3661_s10 + $0x18] sm:$0xff] %v2061_v61  ;;  %v2056_v1 = vadd.f32 %v3655_v47, %v2055_v63  ;;  %v1764_v7 = vsel %vm1636_vm10, %v1530_v55, %v1700_v62 }
 0x229   : > { %2366 = vst [vmem:[%s3661_s10 + $0x10] sm:$0xff] %v2056_v1  ;;  %v1763_v2 = vsel %vm1635_vm11, %v1525_v60, %v1699_v0 }
 0x22a   : > { %v2966_v5 = vpop.f32.mrf.mxu0  ;;  %3065 = vmatprep.mubr.msk.f32.mxu1 %vm1786_vm14, %v1763_v2 }
 0x22b   : > { %v2995_v6 = vpop.f32.mrf.mxu1  ;;  %v1540_v8 = vadd.f32 %v2966_v5, %v3507_v4  ;;  %3066 = vmatmul.mubr.msk.f32.gmra.mxu1 %vm1786_vm14, %v1764_v7 }
 0x22c   : > { %v2071_v9 = vadd.f32 %v2995_v6, %v3655_v47  ;;  %v1534_v10 = vpop.f32.mrf.mxu0 }
 0x22d   : > { %v2065_v11 = vpop.f32.mrf.mxu1  ;;  %v1535_v12 = vadd.f32 %v3507_v4, %v1534_v10  ;;  %v1702_v14 = vmul.f32 0.01, %v1540_v8  ;;  %vm1638_vm12 = vcmp.gt.f32.partialorder %v1540_v8, 0.0 }
 0x22e   : > { %2369 = vst [vmem:[%s3661_s10 + $0x28] sm:$0xff] %v2071_v9  ;;  %v2066_v13 = vadd.f32 %v3655_v47, %v2065_v11 }
 0x22f   : > { %vm1637_vm13 = vcmp.gt.f32.partialorder %v1535_v12, 0.0  ;;  %v1701_v15 = vmul.f32 0.01, %v1535_v12  ;;  %v1766_v19 = vsel %vm1638_vm12, %v1540_v8, %v1702_v14 }
 0x230   : > { %2368 = vst [vmem:[%s3661_s10 + $0x20] sm:$0xff] %v2066_v13 }
 0x231   : > { %v1765_v16 = vsel %vm1637_vm13, %v1535_v12, %v1701_v15 }
 0x232   : > { %v2969_v17 = vpop.f32.mrf.mxu0  ;;  %3068 = vmatprep.mubr.msk.f32.mxu1 %vm1786_vm14, %v1765_v16 }
 0x233   : > { %v2998_v18 = vpop.f32.mrf.mxu1  ;;  %v1550_v20 = vadd.f32 %v2969_v17, %v3507_v4  ;;  %3069 = vmatmul.mubr.msk.f32.gmra.mxu1 %vm1786_vm14, %v1766_v19 }
 0x234   : > { %v2081_v21 = vadd.f32 %v2998_v18, %v3655_v47  ;;  %v1544_v22 = vpop.f32.mrf.mxu0 }
 0x235   : > { %v2075_v23 = vpop.f32.mrf.mxu1  ;;  %v1545_v24 = vadd.f32 %v3507_v4, %v1544_v22  ;;  %v1704_v26 = vmul.f32 0.01, %v1550_v20  ;;  %vm1640_vm15 = vcmp.gt.f32.partialorder %v1550_v20, 0.0 }
 0x236   : > { %2371 = vst [vmem:[%s3661_s10 + $0x38] sm:$0xff] %v2081_v21  ;;  %v2076_v25 = vadd.f32 %v3655_v47, %v2075_v23 }
 0x237   : > { %vm1639_vm0 = vcmp.gt.f32.partialorder %v1545_v24, 0.0  ;;  %v1703_v27 = vmul.f32 0.01, %v1545_v24  ;;  %v1768_v31 = vsel %vm1640_vm15, %v1550_v20, %v1704_v26 }
 0x238   : > { %2370 = vst [vmem:[%s3661_s10 + $0x30] sm:$0xff] %v2076_v25 }
 0x239   : > { %v1767_v28 = vsel %vm1639_vm0, %v1545_v24, %v1703_v27 }
 0x23a   : > { %v2972_v29 = vpop.f32.mrf.mxu0  ;;  %3071 = vmatprep.mubr.msk.f32.mxu1 %vm1786_vm14, %v1767_v28 }
 0x23b   : > { %v3001_v30 = vpop.f32.mrf.mxu1  ;;  %v1560_v59 = vadd.f32 %v2972_v29, %v3507_v4  ;;  %3072 = vmatmul.mubr.msk.f32.gmra.mxu1 %vm1786_vm14, %v1768_v31 }
 0x23c   : > { %v2091_v32 = vadd.f32 %v3001_v30, %v3655_v47  ;;  %v1554_v33 = vpop.f32.mrf.mxu0 }
 0x23d   : > { %v2085_v34 = vpop.f32.mrf.mxu1  ;;  %v1555_v35 = vadd.f32 %v3507_v4, %v1554_v33  ;;  %v1706_v36 = vmul.f32 0.01, %v1560_v59  ;;  %vm1642_vm1 = vcmp.gt.f32.partialorder %v1560_v59, 0.0 }
 0x23e   : > { %2373 = vst [vmem:[%s3661_s10 + $0x48] sm:$0xff] %v2091_v32  ;;  %v2086_v3 = vadd.f32 %v3655_v47, %v2085_v34 }
 0x23f   : > { %vm1641_vm2 = vcmp.gt.f32.partialorder %v1555_v35, 0.0  ;;  %v1705_v37 = vmul.f32 0.01, %v1555_v35  ;;  %v1770_v41 = vsel %vm1642_vm1, %v1560_v59, %v1706_v36 }
 0x240   : > { %2372 = vst [vmem:[%s3661_s10 + $0x40] sm:$0xff] %v2086_v3 }
 0x241   : > { %v1769_v38 = vsel %vm1641_vm2, %v1555_v35, %v1705_v37 }
 0x242   : > { %v2975_v39 = vpop.f32.mrf.mxu0  ;;  %3074 = vmatprep.mubr.msk.f32.mxu1 %vm1786_vm14, %v1769_v38 }
 0x243   : > { %v3004_v40 = vpop.f32.mrf.mxu1  ;;  %v1570_v42 = vadd.f32 %v2975_v39, %v3507_v4  ;;  %3075 = vmatmul.mubr.msk.f32.gmra.mxu1 %vm1786_vm14, %v1770_v41 }
 0x244   : > { %v2101_v43 = vadd.f32 %v3004_v40, %v3655_v47  ;;  %v1564_v44 = vpop.f32.mrf.mxu0 }
 0x245   : > { %v2095_v45 = vpop.f32.mrf.mxu1  ;;  %v1565_v46 = vadd.f32 %v3507_v4, %v1564_v44  ;;  %v1708_v49 = vmul.f32 0.01, %v1570_v42  ;;  %vm1644_vm3 = vcmp.gt.f32.partialorder %v1570_v42, 0.0 }
 0x246   : > { %2375 = vst [vmem:[%s3661_s10 + $0x58] sm:$0xff] %v2101_v43  ;;  %v2096_v48 = vadd.f32 %v3655_v47, %v2095_v45 }
 0x247   : > { %vm1643_vm4 = vcmp.gt.f32.partialorder %v1565_v46, 0.0  ;;  %v1707_v50 = vmul.f32 0.01, %v1565_v46  ;;  %v1772_v54 = vsel %vm1644_vm3, %v1570_v42, %v1708_v49 }
 0x248   : > { %2374 = vst [vmem:[%s3661_s10 + $0x50] sm:$0xff] %v2096_v48 }
 0x249   : > { %v1771_v51 = vsel %vm1643_vm4, %v1565_v46, %v1707_v50 }
 0x24a   : > { %v2978_v52 = vpop.f32.mrf.mxu0  ;;  %3077 = vmatprep.mubr.msk.f32.mxu1 %vm1786_vm14, %v1771_v51 }
 0x24b   : > { %v3007_v53 = vpop.f32.mrf.mxu1  ;;  %v1580_v55 = vadd.f32 %v2978_v52, %v3507_v4  ;;  %3078 = vmatmul.mubr.msk.f32.gmra.mxu1 %vm1786_vm14, %v1772_v54 }
 0x24c   : > { %v2111_v56 = vadd.f32 %v3007_v53, %v3655_v47  ;;  %v1574_v57 = vpop.f32.mrf.mxu0 }
 0x24d   : > { %v2105_v58 = vpop.f32.mrf.mxu1  ;;  %v1575_v60 = vadd.f32 %v3507_v4, %v1574_v57  ;;  %v1710_v62 = vmul.f32 0.01, %v1580_v55  ;;  %vm1646_vm5 = vcmp.gt.f32.partialorder %v1580_v55, 0.0 }
 0x24e   : > { %2377 = vst [vmem:[%s3661_s10 + $0x68] sm:$0xff] %v2111_v56  ;;  %v2106_v61 = vadd.f32 %v3655_v47, %v2105_v58 }
 0x24f   : > { %vm1645_vm6 = vcmp.gt.f32.partialorder %v1575_v60, 0.0  ;;  %v1709_v63 = vmul.f32 0.01, %v1575_v60  ;;  %v1774_v2 = vsel %vm1646_vm5, %v1580_v55, %v1710_v62 }
 0x250   : > { %2376 = vst [vmem:[%s3661_s10 + $0x60] sm:$0xff] %v2106_v61 }
 0x251   : > { %v1773_v0 = vsel %vm1645_vm6, %v1575_v60, %v1709_v63 }
 0x252   : > { %3080 = vmatprep.mubr.msk.f32.mxu1 %vm1786_vm14, %v1773_v0 }
 0x253   : > { %v3010_v1 = vpop.f32.mrf.mxu1  ;;  %3081 = vmatmul.mubr.msk.f32.gmra.mxu1 %vm1786_vm14, %v1774_v2 }
 0x254   : > { %v2121_v5 = vadd.f32 %v3010_v1, %v3655_v47 }
 0x255   : > { %v2115_v4 = vpop.f32.mrf.mxu1 }
 0x256   : > { %2379 = vst [vmem:[%s3661_s10 + $0x78] sm:$0xff] %v2121_v5  ;;  %v2116_v6 = vadd.f32 %v3655_v47, %v2115_v4 }
 0x258   : > { %2378 = vst [vmem:[%s3661_s10 + $0x70] sm:$0xff] %v2116_v6 }
 0x25b   : > { %v3013_v7 = vpop.f32.mrf.mxu1 }
 0x25c   : > { %v2131_v8 = vadd.f32 %v3013_v7, %v3655_v47 }
 0x25d   : > { %v2125_v9 = vpop.f32.mrf.mxu1 }
 0x25e   : > { %2381 = vst [vmem:[%s3661_s10 + $0x88] sm:$0xff] %v2131_v8  ;;  %v2126_v10 = vadd.f32 %v3655_v47, %v2125_v9 }
 0x260   : > { %2380 = vst [vmem:[%s3661_s10 + $0x80] sm:$0xff] %v2126_v10 }
 0x263   : > { %v3016_v11 = vpop.f32.mrf.mxu1 }
 0x264   : > { %v2141_v12 = vadd.f32 %v3016_v11, %v3655_v47 }
 0x265   : > { %v2135_v13 = vpop.f32.mrf.mxu1 }
 0x266   : > { %2383 = vst [vmem:[%s3661_s10 + $0x98] sm:$0xff] %v2141_v12  ;;  %v2136_v14 = vadd.f32 %v3655_v47, %v2135_v13 }
 0x268   : > { %2382 = vst [vmem:[%s3661_s10 + $0x90] sm:$0xff] %v2136_v14 }
 0x26b   : > { %v3019_v15 = vpop.f32.mrf.mxu1 }
 0x26c   : > { %v2151_v16 = vadd.f32 %v3019_v15, %v3655_v47 }
 0x26d   : > { %v2145_v17 = vpop.f32.mrf.mxu1 }
 0x26e   : > { %2385 = vst [vmem:[%s3661_s10 + $0xa8] sm:$0xff] %v2151_v16  ;;  %v2146_v18 = vadd.f32 %v3655_v47, %v2145_v17 }
 0x270   : > { %2384 = vst [vmem:[%s3661_s10 + $0xa0] sm:$0xff] %v2146_v18 }
 0x273   : > { %v3022_v19 = vpop.f32.mrf.mxu1 }
 0x274   : > { %v2161_v20 = vadd.f32 %v3022_v19, %v3655_v47 }
 0x275   : > { %v2155_v21 = vpop.f32.mrf.mxu1 }
 0x276   : > { %2387 = vst [vmem:[%s3661_s10 + $0xb8] sm:$0xff] %v2161_v20  ;;  %v2156_v22 = vadd.f32 %v3655_v47, %v2155_v21 }
 0x278   : > { %2386 = vst [vmem:[%s3661_s10 + $0xb0] sm:$0xff] %v2156_v22 }
 0x27b   : > { %v3025_v23 = vpop.f32.mrf.mxu1 }
 0x27c   : > { %v2171_v24 = vadd.f32 %v3025_v23, %v3655_v47 }
 0x27d   : > { %v2165_v25 = vpop.f32.mrf.mxu1 }
 0x27e   : > { %2389 = vst [vmem:[%s3661_s10 + $0xc8] sm:$0xff] %v2171_v24  ;;  %v2166_v26 = vadd.f32 %v3655_v47, %v2165_v25 }
 0x280   : > { %2388 = vst [vmem:[%s3661_s10 + $0xc0] sm:$0xff] %v2166_v26 }
 0x283   : > { %v3028_v27 = vpop.f32.mrf.mxu1 }
 0x284   : > { %v2181_v28 = vadd.f32 %v3028_v27, %v3655_v47 }
 0x285   : > { %v2175_v29 = vpop.f32.mrf.mxu1 }
 0x286   : > { %2391 = vst [vmem:[%s3661_s10 + $0xd8] sm:$0xff] %v2181_v28  ;;  %v2176_v30 = vadd.f32 %v3655_v47, %v2175_v29 }
 0x288   : > { %2390 = vst [vmem:[%s3661_s10 + $0xd0] sm:$0xff] %v2176_v30 }
 0x28b   : > { %v3031_v31 = vpop.f32.mrf.mxu1 }
 0x28c   : > { %v2191_v59 = vadd.f32 %v3031_v31, %v3655_v47 }
 0x28d   : > { %v2185_v32 = vpop.f32.mrf.mxu1 }
 0x28e   : > { %2393 = vst [vmem:[%s3661_s10 + $0xe8] sm:$0xff] %v2191_v59  ;;  %v2186_v33 = vadd.f32 %v3655_v47, %v2185_v32 }
 0x290   : > { %2392 = vst [vmem:[%s3661_s10 + $0xe0] sm:$0xff] %v2186_v33 }
 0x293   : > { %v3034_v34 = vpop.f32.mrf.mxu1 }
 0x294   : > { %v2201_v35 = vadd.f32 %v3034_v34, %v3655_v47 }
 0x295   : > { %v2195_v3 = vpop.f32.mrf.mxu1 }
 0x296   : > { %2395 = vst [vmem:[%s3661_s10 + $0xf8] sm:$0xff] %v2201_v35  ;;  %v2196_v36 = vadd.f32 %v3655_v47, %v2195_v3 }
 0x298   : > { %2394 = vst [vmem:[%s3661_s10 + $0xf0] sm:$0xff] %v2196_v36 }
 0x29b   : > { %v3037_v37 = vpop.f32.mrf.mxu1 }
 0x29c   : > { %v2211_v38 = vadd.f32 %v3037_v37, %v3655_v47 }
 0x29d   : > { %v2205_v39 = vpop.f32.mrf.mxu1 }
 0x29e   : > { %2397 = vst [vmem:[%s3661_s10 + $0x108] sm:$0xff] %v2211_v38  ;;  %v2206_v40 = vadd.f32 %v3655_v47, %v2205_v39 }
 0x2a0   : > { %2396 = vst [vmem:[%s3661_s10 + $0x100] sm:$0xff] %v2206_v40 }
 0x2a3   : > { %v3040_v41 = vpop.f32.mrf.mxu1 }
 0x2a4   : > { %v2221_v42 = vadd.f32 %v3040_v41, %v3655_v47 }
 0x2a5   : > { %v2215_v43 = vpop.f32.mrf.mxu1 }
 0x2a6   : > { %2399 = vst [vmem:[%s3661_s10 + $0x118] sm:$0xff] %v2221_v42  ;;  %v2216_v44 = vadd.f32 %v3655_v47, %v2215_v43 }
 0x2a8   : > { %2398 = vst [vmem:[%s3661_s10 + $0x110] sm:$0xff] %v2216_v44 }
 0x2ab   : > { %v3043_v45 = vpop.f32.mrf.mxu1 }
 0x2ac   : > { %v2231_v46 = vadd.f32 %v3043_v45, %v3655_v47 }
 0x2ad   : > { %v2225_v48 = vpop.f32.mrf.mxu1 }
 0x2ae   : > { %2401 = vst [vmem:[%s3661_s10 + $0x128] sm:$0xff] %v2231_v46  ;;  %v2226_v49 = vadd.f32 %v3655_v47, %v2225_v48 }
 0x2b0   : > { %2400 = vst [vmem:[%s3661_s10 + $0x120] sm:$0xff] %v2226_v49 }
 0x2b3   : > { %v3046_v50 = vpop.f32.mrf.mxu1 }
 0x2b4   : > { %v2241_v51 = vadd.f32 %v3046_v50, %v3655_v47 }
 0x2b5   : > { %v2235_v52 = vpop.f32.mrf.mxu1 }
 0x2b6   : > { %2403 = vst [vmem:[%s3661_s10 + $0x138] sm:$0xff] %v2241_v51  ;;  %v2236_v53 = vadd.f32 %v3655_v47, %v2235_v52 }
 0x2b8   : > { %2402 = vst [vmem:[%s3661_s10 + $0x130] sm:$0xff] %v2236_v53 }
 0x2bb   : > { %v3049_v54 = vpop.f32.mrf.mxu1 }
 0x2bc   : > { %v2251_v55 = vadd.f32 %v3049_v54, %v3655_v47 }
 0x2bd   : > { %v2245_v56 = vpop.f32.mrf.mxu1 }
 0x2be   : > { %2405 = vst [vmem:[%s3661_s10 + $0x148] sm:$0xff] %v2251_v55  ;;  %v2246_v57 = vadd.f32 %v3655_v47, %v2245_v56 }
 0x2c0   : > { %2404 = vst [vmem:[%s3661_s10 + $0x140] sm:$0xff] %v2246_v57 }
 0x2c3   : > { %v3052_v58 = vpop.f32.mrf.mxu1 }
 0x2c4   : > { %v2261_v60 = vadd.f32 %v3052_v58, %v3655_v47 }
 0x2c5   : > { %v2255_v61 = vpop.f32.mrf.mxu1 }
 0x2c6   : > { %2407 = vst [vmem:[%s3661_s10 + $0x158] sm:$0xff] %v2261_v60  ;;  %v2256_v62 = vadd.f32 %v3655_v47, %v2255_v61 }
 0x2c8   : > { %2406 = vst [vmem:[%s3661_s10 + $0x150] sm:$0xff] %v2256_v62 }
 0x2cb   : > { %v3055_v63 = vpop.f32.mrf.mxu1 }
 0x2cc   : > { %v2271_v0 = vadd.f32 %v3055_v63, %v3655_v47 }
 0x2cd   : > { %v2265_v1 = vpop.f32.mrf.mxu1 }
 0x2ce   : > { %2409 = vst [vmem:[%s3661_s10 + $0x168] sm:$0xff] %v2271_v0  ;;  %v2266_v2 = vadd.f32 %v3655_v47, %v2265_v1 }
 0x2d0   : > { %2408 = vst [vmem:[%s3661_s10 + $0x160] sm:$0xff] %v2266_v2 }
 0x2d3   : > { %v3058_v5 = vpop.f32.mrf.mxu1 }
 0x2d4   : > { %v2281_v4 = vadd.f32 %v3058_v5, %v3655_v47 }
 0x2d5   : > { %v2275_v6 = vpop.f32.mrf.mxu1 }
 0x2d6   : > { %2411 = vst [vmem:[%s3661_s10 + $0x178] sm:$0xff] %v2281_v4  ;;  %v2276_v7 = vadd.f32 %v3655_v47, %v2275_v6 }
 0x2d8   : > { %2410 = vst [vmem:[%s3661_s10 + $0x170] sm:$0xff] %v2276_v7 }
 0x2db   : > { %v3061_v8 = vpop.f32.mrf.mxu1 }
 0x2dc   : > { %v2291_v9 = vadd.f32 %v3061_v8, %v3655_v47 }
 0x2dd   : > { %v2285_v10 = vpop.f32.mrf.mxu1 }
 0x2de   : > { %2413 = vst [vmem:[%s3661_s10 + $0x188] sm:$0xff] %v2291_v9  ;;  %v2286_v11 = vadd.f32 %v3655_v47, %v2285_v10 }
 0x2e0   : > { %2412 = vst [vmem:[%s3661_s10 + $0x180] sm:$0xff] %v2286_v11 }
 0x2e3   : > { %v3064_v12 = vpop.f32.mrf.mxu1 }
 0x2e4   : > { %v2301_v13 = vadd.f32 %v3064_v12, %v3655_v47 }
 0x2e5   : > { %v2295_v14 = vpop.f32.mrf.mxu1 }
 0x2e6   : > { %2415 = vst [vmem:[%s3661_s10 + $0x198] sm:$0xff] %v2301_v13  ;;  %v2296_v15 = vadd.f32 %v3655_v47, %v2295_v14 }
 0x2e8   : > { %2414 = vst [vmem:[%s3661_s10 + $0x190] sm:$0xff] %v2296_v15 }
 0x2eb   : > { %v3067_v16 = vpop.f32.mrf.mxu1 }
 0x2ec   : > { %v2311_v17 = vadd.f32 %v3067_v16, %v3655_v47 }
 0x2ed   : > { %v2305_v18 = vpop.f32.mrf.mxu1 }
 0x2ee   : > { %2417 = vst [vmem:[%s3661_s10 + $0x1a8] sm:$0xff] %v2311_v17  ;;  %v2306_v19 = vadd.f32 %v3655_v47, %v2305_v18 }
 0x2f0   : > { %2416 = vst [vmem:[%s3661_s10 + $0x1a0] sm:$0xff] %v2306_v19 }
 0x2f3   : > { %v3070_v20 = vpop.f32.mrf.mxu1 }
 0x2f4   : > { %v2321_v21 = vadd.f32 %v3070_v20, %v3655_v47 }
 0x2f5   : > { %v2315_v22 = vpop.f32.mrf.mxu1 }
 0x2f6   : > { %2419 = vst [vmem:[%s3661_s10 + $0x1b8] sm:$0xff] %v2321_v21  ;;  %v2316_v23 = vadd.f32 %v3655_v47, %v2315_v22 }
 0x2f8   : > { %2418 = vst [vmem:[%s3661_s10 + $0x1b0] sm:$0xff] %v2316_v23 }
 0x2fb   : > { %v3073_v24 = vpop.f32.mrf.mxu1 }
 0x2fc   : > { %v2331_v25 = vadd.f32 %v3073_v24, %v3655_v47 }
 0x2fd   : > { %v2325_v26 = vpop.f32.mrf.mxu1 }
 0x2fe   : > { %2421 = vst [vmem:[%s3661_s10 + $0x1c8] sm:$0xff] %v2331_v25  ;;  %v2326_v27 = vadd.f32 %v3655_v47, %v2325_v26 }
 0x300   : > { %2420 = vst [vmem:[%s3661_s10 + $0x1c0] sm:$0xff] %v2326_v27 }
 0x303   : > { %v3076_v28 = vpop.f32.mrf.mxu1 }
 0x304   : > { %v2341_v29 = vadd.f32 %v3076_v28, %v3655_v47 }
 0x305   : > { %v2335_v30 = vpop.f32.mrf.mxu1 }
 0x306   : > { %2423 = vst [vmem:[%s3661_s10 + $0x1d8] sm:$0xff] %v2341_v29  ;;  %v2336_v31 = vadd.f32 %v3655_v47, %v2335_v30 }
 0x308   : > { %2422 = vst [vmem:[%s3661_s10 + $0x1d0] sm:$0xff] %v2336_v31 }
 0x30b   : > { %v3079_v59 = vpop.f32.mrf.mxu1 }
 0x30c   : > { %v2351_v32 = vadd.f32 %v3079_v59, %v3655_v47 }
 0x30d   : > { %v2345_v33 = vpop.f32.mrf.mxu1 }
 0x30e   : > { %2425 = vst [vmem:[%s3661_s10 + $0x1e8] sm:$0xff] %v2351_v32  ;;  %v2346_v34 = vadd.f32 %v3655_v47, %v2345_v33 }
 0x310   : > { %2424 = vst [vmem:[%s3661_s10 + $0x1e0] sm:$0xff] %v2346_v34 }
 0x313   : > { %v3082_v35 = vpop.f32.mrf.mxu1 }
 0x314   : > { %v2361_v3 = vadd.f32 %v3082_v35, %v3655_v47 }
 0x315   : > { %v2355_v36 = vpop.f32.mrf.mxu1 }
 0x316   : > { %2427 = vst [vmem:[%s3661_s10 + $0x1f8] sm:$0xff] %v2361_v3  ;;  %v2356_v37 = vadd.f32 %v3655_v47, %v2355_v36 }
 0x318   : > { %2426 = vst [vmem:[%s3661_s10 + $0x1f0] sm:$0xff] %v2356_v37 }
 0x319 PF: > { %s16_s21 = sadd.s32 1, %s3101_s21  }
 0x31a   : > { %p13_p4 = scmp.ge.s32.totalorder %s16_s21, 6  }
 0x31c   :  { %15 = sbr.rel (!%p13_p4) target bundleno = 1 (0x1), region = 77 }

</bundles_post_ra>
